<compile_context>
chip_gen: v5e
topology: v5e:2x2
jax: 0.10.0
libtpu: 0.0.40
codegen_flags: <defaults>
</compile_context>

<pallas_src>
import functools
import math

import jax
import jax.numpy as jnp
from jax.experimental import pallas as pl
from jax.experimental.pallas import tpu as pltpu

LN_EPS = 1e-6
VMEM_LIMIT = 48 * 1024 * 1024   # stays inside v7x's 64 MiB physical VMEM


# ------------------------------ in-kernel helpers ----------------------------

def _layernorm_f32(x, g, b):
    mu = jnp.mean(x, axis=-1, keepdims=True)
    var = jnp.mean((x - mu) ** 2, axis=-1, keepdims=True)
    return (x - mu) * jax.lax.rsqrt(var + LN_EPS) * g + b


def _softmax_rows(s):
    s = s - jnp.max(s, axis=-1, keepdims=True)
    p = jnp.exp(s)
    return p * pl.reciprocal(jnp.sum(p, axis=-1, keepdims=True), approx=True)


def _heads_attention(q_all, k_all, v_all, num_heads):
    """q_all: (T, D) f32, k_all/v_all: (S, D) f32 -> concat-head (T, D) f32."""
    D = q_all.shape[-1]
    dh = D // num_heads
    scale = 1.0 / math.sqrt(dh)
    outs = []
    for h in range(num_heads):                       # unrolled; heads stay on lanes
        q = q_all[:, h * dh:(h + 1) * dh].astype(jnp.bfloat16)
        k = k_all[:, h * dh:(h + 1) * dh].astype(jnp.bfloat16)
        v = v_all[:, h * dh:(h + 1) * dh].astype(jnp.bfloat16)
        s = jax.lax.dot_general(q, k, (((1,), (1,)), ((), ())),
                                preferred_element_type=jnp.float32) * scale
        p = _softmax_rows(s)
        outs.append(jnp.dot(p.astype(jnp.bfloat16), v,
                            preferred_element_type=jnp.float32))
    return jnp.concatenate(outs, axis=-1)            # (T, D) concat-head layout


# ---------------------------------- kernel ------------------------------------

def _decoder_layer_kernel(x_ref, m_ref, lng_ref, lnb_ref,
                          wqkv_ref, bqkv_ref, wo0_ref, bo0_ref,
                          wq_ref, bq_ref, wkv_ref, bkv_ref, wo1_ref, bo1_ref,
                          w1_ref, b1_ref, w2_ref, b2_ref,
                          o_ref, *, num_heads):
    x = x_ref[0].astype(jnp.float32)                               # (T, D)
    mem = m_ref[0].astype(jnp.bfloat16)                            # (S, D), no LN
    D = x.shape[-1]

    # ---- sublayer 0: x = x + Wo @ self_attn(LN0(x)) --------------------------
    n0 = _layernorm_f32(x, lng_ref[0:1, :], lnb_ref[0:1, :])
    qkv = (jnp.dot(n0.astype(jnp.bfloat16), wqkv_ref[...],
                   preferred_element_type=jnp.float32) + bqkv_ref[...])  # (T, 3D)
    heads0 = _heads_attention(qkv[:, 0:D], qkv[:, D:2 * D], qkv[:, 2 * D:3 * D],
                              num_heads)
    x = (x + jnp.dot(heads0.astype(jnp.bfloat16), wo0_ref[...],
                     preferred_element_type=jnp.float32) + bo0_ref[...])

    # ---- sublayer 1: x = x + Wo @ src_attn(LN1(x), m, m) ---------------------
    n1 = _layernorm_f32(x, lng_ref[1:2, :], lnb_ref[1:2, :])
    q_all = (jnp.dot(n1.astype(jnp.bfloat16), wq_ref[...],
                     preferred_element_type=jnp.float32) + bq_ref[...])  # (T, D)
    kv = (jnp.dot(mem, wkv_ref[...],
                  preferred_element_type=jnp.float32) + bkv_ref[...])    # (S, 2D)
    heads1 = _heads_attention(q_all, kv[:, 0:D], kv[:, D:2 * D], num_heads)
    x = (x + jnp.dot(heads1.astype(jnp.bfloat16), wo1_ref[...],
                     preferred_element_type=jnp.float32) + bo1_ref[...])

    # ---- sublayer 2: x = x + W2 @ relu(W1 @ LN2(x) + b1) + b2 ----------------
    n2 = _layernorm_f32(x, lng_ref[2:3, :], lnb_ref[2:3, :])
    h = (jnp.dot(n2.astype(jnp.bfloat16), w1_ref[...],
                 preferred_element_type=jnp.float32) + b1_ref[...])      # (T, F)
    h = jnp.maximum(h, 0.0)
    x = (x + jnp.dot(h.astype(jnp.bfloat16), w2_ref[...],
                     preferred_element_type=jnp.float32) + b2_ref[...])

    o_ref[0] = x.astype(o_ref.dtype)


# ---------------------------------- wrapper ------------------------------------

def _bytes(*arrays):
    return int(sum(a.size * a.dtype.itemsize for a in arrays))


def decoder_layer_forward(x, m, params, num_heads):
    """x: (B, T, D) target stream, m: (B, S, D) encoder memory."""
    B, T, D = x.shape
    S = m.shape[1]
    F = params["ff"]["w1"].shape[1]
    dh = D // num_heads
    sa, ca, ff = params["self_attn"], params["src_attn"], params["ff"]

    flops_per_batch = (
        2 * T * D * 3 * D + 4 * T * T * D + 2 * T * D * D      # self-attn
        + 2 * T * D * D + 2 * S * D * 2 * D + 4 * T * S * D + 2 * T * D * D  # cross
        + 4 * T * D * F)                                        # FFN
    cost = pl.CostEstimate(
        flops=int(B * flops_per_batch),
        transcendentals=int(B * num_heads * (T * T + T * S)),
        bytes_accessed=_bytes(x, x, m, sa["wqkv"], sa["bqkv"], sa["wo"], sa["bo"],
                              ca["wq"], ca["bq"], ca["wkv"], ca["bkv"],
                              ca["wo"], ca["bo"], ff["w1"], ff["b1"],
                              ff["w2"], ff["b2"],
                              params["ln_g"], params["ln_b"]))

    rep = lambda b: (0, 0)   # replicated (weights / LN params): DMA'd once
    return pl.pallas_call(
        functools.partial(_decoder_layer_kernel, num_heads=num_heads),
        out_shape=jax.ShapeDtypeStruct((B, T, D), x.dtype),
        grid=(B,),
        in_specs=[
            pl.BlockSpec((1, T, D), lambda b: (b, 0, 0)),      # x
            pl.BlockSpec((1, S, D), lambda b: (b, 0, 0)),      # m
            pl.BlockSpec((3, D), rep),                         # ln gamma (3 LNs)
            pl.BlockSpec((3, D), rep),                         # ln beta
            pl.BlockSpec((D, 3 * D), rep),                     # wqkv
            pl.BlockSpec((1, 3 * D), rep),                     # bqkv
            pl.BlockSpec((D, D), rep),                         # wo (self)
            pl.BlockSpec((1, D), rep),                         # bo (self)
            pl.BlockSpec((D, D), rep),                         # wq (cross)
            pl.BlockSpec((1, D), rep),                         # bq (cross)
            pl.BlockSpec((D, 2 * D), rep),                     # wkv (cross)
            pl.BlockSpec((1, 2 * D), rep),                     # bkv (cross)
            pl.BlockSpec((D, D), rep),                         # wo (cross)
            pl.BlockSpec((1, D), rep),                         # bo (cross)
            pl.BlockSpec((D, F), rep),                         # w1
            pl.BlockSpec((1, F), rep),                         # b1
            pl.BlockSpec((F, D), rep),                         # w2
            pl.BlockSpec((1, D), rep),                         # b2
        ],
        out_specs=pl.BlockSpec((1, T, D), lambda b: (b, 0, 0)),
        input_output_aliases={0: 0},
        compiler_params=pltpu.CompilerParams(
            dimension_semantics=("parallel",), vmem_limit_bytes=VMEM_LIMIT),
        cost_estimate=cost,
    )(x, m, params["ln_g"], params["ln_b"],
      sa["wqkv"], sa["bqkv"], sa["wo"], sa["bo"],
      ca["wq"], ca["bq"], ca["wkv"], ca["bkv"], ca["wo"], ca["bo"],
      ff["w1"], ff["b1"], ff["w2"], ff["b2"])


# --------------------------- pure-JAX reference --------------------------------

def _reference_forward(x, m, params, num_heads):
    """Mirrors the kernel's bf16-matmul / f32-accumulate numerics."""
    def ln(y, g, b):
        mu = jnp.mean(y, axis=-1, keepdims=True)
        var = jnp.mean((y - mu) ** 2, axis=-1, keepdims=True)
        return (y - mu) * jax.lax.rsqrt(var + LN_EPS) * g + b

    def mm(a, w):
        return jnp.einsum("btd,df->btf", a.astype(jnp.bfloat16), w,
                          preferred_element_type=jnp.float32)

    def mha(q, k, v):
        B, T, D = q.shape
        S = k.shape[1]
        dh = D // num_heads
        qh = q.reshape(B, T, num_heads, dh).transpose(0, 2, 1, 3).astype(jnp.bfloat16)
        kh = k.reshape(B, S, num_heads, dh).transpose(0, 2, 1, 3).astype(jnp.bfloat16)
        vh = v.reshape(B, S, num_heads, dh).transpose(0, 2, 1, 3).astype(jnp.bfloat16)
        s = jnp.einsum("bhtd,bhsd->bhts", qh, kh,
                       preferred_element_type=jnp.float32) / math.sqrt(dh)
        p = jax.nn.softmax(s, axis=-1)
        o = jnp.einsum("bhts,bhsd->bhtd", p.astype(jnp.bfloat16), vh,
                       preferred_element_type=jnp.float32)
        return o.transpose(0, 2, 1, 3).reshape(B, T, D)

    D = x.shape[-1]
    sa, ca, ff = params["self_attn"], params["src_attn"], params["ff"]
    g, b = params["ln_g"], params["ln_b"]

    n0 = ln(x, g[0], b[0])
    qkv = mm(n0, sa["wqkv"]) + sa["bqkv"]
    h0 = mha(qkv[..., 0:D], qkv[..., D:2 * D], qkv[..., 2 * D:3 * D])
    x = x + mm(h0, sa["wo"]) + sa["bo"]

    n1 = ln(x, g[1], b[1])
    q = mm(n1, ca["wq"]) + ca["bq"]
    kv = mm(m, ca["wkv"]) + ca["bkv"]
    h1 = mha(q, kv[..., 0:D], kv[..., D:2 * D])
    x = x + mm(h1, ca["wo"]) + ca["bo"]

    n2 = ln(x, g[2], b[2])
    h = jnp.maximum(mm(n2, ff["w1"]) + ff["b1"], 0.0)
    return x + mm(h, ff["w2"]) + ff["b2"]


# ------------------------------ parameter init ---------------------------------

def init_params(key, D, F):
    def lin(k, fan_in, fan_out):
        scale = 1.0 / math.sqrt(fan_in)
        kw, kb = jax.random.split(k)
        w = jax.random.uniform(kw, (fan_in, fan_out), jnp.float32, -scale, scale)
        b = jax.random.uniform(kb, (1, fan_out), jnp.float32, -scale, scale)
        return w, b

    ks = jax.random.split(key, 10)
    wq0, bq0 = lin(ks[0], D, D)
    wk0, bk0 = lin(ks[1], D, D)
    wv0, bv0 = lin(ks[2], D, D)
    wo0, bo0 = lin(ks[3], D, D)
    wq1, bq1 = lin(ks[4], D, D)
    wk1, bk1 = lin(ks[5], D, D)
    wv1, bv1 = lin(ks[6], D, D)
    wo1, bo1 = lin(ks[7], D, D)
    w1, b1 = lin(ks[8], D, F)
    w2, b2 = lin(ks[9], F, D)

    return dict(
        self_attn=dict(
            wqkv=jnp.concatenate([wq0, wk0, wv0], axis=1).astype(jnp.bfloat16),
            bqkv=jnp.concatenate([bq0, bk0, bv0], axis=1),
            wo=wo0.astype(jnp.bfloat16), bo=bo0),
        src_attn=dict(
            wq=wq1.astype(jnp.bfloat16), bq=bq1,
            wkv=jnp.concatenate([wk1, wv1], axis=1).astype(jnp.bfloat16),
            bkv=jnp.concatenate([bk1, bv1], axis=1),
            wo=wo1.astype(jnp.bfloat16), bo=bo1),
        ff=dict(w1=w1.astype(jnp.bfloat16), b1=b1,
                w2=w2.astype(jnp.bfloat16), b2=b2),
        ln_g=jnp.ones((3, D), jnp.float32),
        ln_b=jnp.zeros((3, D), jnp.float32),
    )


# ----------------------------------- main ---------------------------------------

if __name__ == "__main__":
    B, T, S, D, H, F = 2, 8, 8, 128, 4, 256   # dh = 32, lane-dense activations
    assert D % H == 0

    key = jax.random.PRNGKey(0)
    kx, km, kp = jax.random.split(key, 3)
    x = jax.random.normal(kx, (B, T, D), jnp.float32)   # decoder input
    m = jax.random.normal(km, (B, S, D), jnp.float32)   # encoder memory
    params = init_params(kp, D, F)

    fwd = jax.jit(decoder_layer_forward, static_argnames=("num_heads",))
    out = fwd(x, m, params, num_heads=H)
    out = jax.block_until_ready(out)

    assert out.shape == (B, T, D) and out.dtype == jnp.float32
    assert bool(jnp.all(jnp.isfinite(out)))
    ref = _reference_forward(x, m, params, H)
    assert bool(jnp.allclose(out, ref, atol=0.1, rtol=0.1))
    print("KERNEL_OK")
</pallas_src>

<mosaic_0001>
module attributes {stable_mosaic.version = 11 : i64} {
  func.func @_decoder_layer_kernel(%arg0: i32, %arg1: memref<1x8x128xf32, #tpu.memory_space<vmem>>, %arg2: memref<1x8x128xf32, #tpu.memory_space<vmem>>, %arg3: memref<3x128xf32, #tpu.memory_space<vmem>>, %arg4: memref<3x128xf32, #tpu.memory_space<vmem>>, %arg5: memref<128x384xbf16, #tpu.memory_space<vmem>>, %arg6: memref<1x384xf32, #tpu.memory_space<vmem>>, %arg7: memref<128x128xbf16, #tpu.memory_space<vmem>>, %arg8: memref<1x128xf32, #tpu.memory_space<vmem>>, %arg9: memref<128x128xbf16, #tpu.memory_space<vmem>>, %arg10: memref<1x128xf32, #tpu.memory_space<vmem>>, %arg11: memref<128x256xbf16, #tpu.memory_space<vmem>>, %arg12: memref<1x256xf32, #tpu.memory_space<vmem>>, %arg13: memref<128x128xbf16, #tpu.memory_space<vmem>>, %arg14: memref<1x128xf32, #tpu.memory_space<vmem>>, %arg15: memref<128x256xbf16, #tpu.memory_space<vmem>>, %arg16: memref<1x256xf32, #tpu.memory_space<vmem>>, %arg17: memref<256x128xbf16, #tpu.memory_space<vmem>>, %arg18: memref<1x128xf32, #tpu.memory_space<vmem>>, %arg19: memref<1x8x128xf32, #tpu.memory_space<vmem>>) attributes {dimension_semantics = [#tpu.dimension_semantics<parallel>], iteration_bounds = array<i64: 2>, scalar_prefetch = 0 : i64, scratch_operands = 0 : i64, tpu.core_type = #tpu.core_type<tc>, window_params = [{transform_indices = @transform_0, window_bounds = array<i64: 1, 8, 128>}, {transform_indices = @transform_1, window_bounds = array<i64: 1, 8, 128>}, {pipeline_mode = #tpu.pipeline_mode<synchronous>, transform_indices = @transform_2, window_bounds = array<i64: 3, 128>}, {pipeline_mode = #tpu.pipeline_mode<synchronous>, transform_indices = @transform_3, window_bounds = array<i64: 3, 128>}, {pipeline_mode = #tpu.pipeline_mode<synchronous>, transform_indices = @transform_4, window_bounds = array<i64: 128, 384>}, {pipeline_mode = #tpu.pipeline_mode<synchronous>, transform_indices = @transform_5, window_bounds = array<i64: 1, 384>}, {pipeline_mode = #tpu.pipeline_mode<synchronous>, transform_indices = @transform_6, window_bounds = array<i64: 128, 128>}, {pipeline_mode = #tpu.pipeline_mode<synchronous>, transform_indices = @transform_7, window_bounds = array<i64: 1, 128>}, {pipeline_mode = #tpu.pipeline_mode<synchronous>, transform_indices = @transform_8, window_bounds = array<i64: 128, 128>}, {pipeline_mode = #tpu.pipeline_mode<synchronous>, transform_indices = @transform_9, window_bounds = array<i64: 1, 128>}, {pipeline_mode = #tpu.pipeline_mode<synchronous>, transform_indices = @transform_10, window_bounds = array<i64: 128, 256>}, {pipeline_mode = #tpu.pipeline_mode<synchronous>, transform_indices = @transform_11, window_bounds = array<i64: 1, 256>}, {pipeline_mode = #tpu.pipeline_mode<synchronous>, transform_indices = @transform_12, window_bounds = array<i64: 128, 128>}, {pipeline_mode = #tpu.pipeline_mode<synchronous>, transform_indices = @transform_13, window_bounds = array<i64: 1, 128>}, {pipeline_mode = #tpu.pipeline_mode<synchronous>, transform_indices = @transform_14, window_bounds = array<i64: 128, 256>}, {pipeline_mode = #tpu.pipeline_mode<synchronous>, transform_indices = @transform_15, window_bounds = array<i64: 1, 256>}, {pipeline_mode = #tpu.pipeline_mode<synchronous>, transform_indices = @transform_16, window_bounds = array<i64: 256, 128>}, {pipeline_mode = #tpu.pipeline_mode<synchronous>, transform_indices = @transform_17, window_bounds = array<i64: 1, 128>}, {transform_indices = @transform_18, window_bounds = array<i64: 1, 8, 128>}]} {
    %c0 = arith.constant 0 : index
    %c0_0 = arith.constant 0 : index
    %c0_1 = arith.constant 0 : index
    %0 = vector.load %arg1[%c0, %c0_0, %c0_1] : memref<1x8x128xf32, #tpu.memory_space<vmem>>, vector<1x8x128xf32>
    %1 = vector.shape_cast %0 : vector<1x8x128xf32> to vector<8x128xf32>
    %c0_2 = arith.constant 0 : index
    %c0_3 = arith.constant 0 : index
    %c0_4 = arith.constant 0 : index
    %2 = vector.load %arg2[%c0_2, %c0_3, %c0_4] : memref<1x8x128xf32, #tpu.memory_space<vmem>>, vector<1x8x128xf32>
    %3 = vector.shape_cast %2 : vector<1x8x128xf32> to vector<8x128xf32>
    %4 = arith.truncf %3 : vector<8x128xf32> to vector<8x128xbf16>
    %c0_5 = arith.constant 0 : index
    %c0_6 = arith.constant 0 : index
    %5 = vector.load %arg3[%c0_5, %c0_6] : memref<3x128xf32, #tpu.memory_space<vmem>>, vector<1x128xf32>
    %c0_7 = arith.constant 0 : index
    %c0_8 = arith.constant 0 : index
    %6 = vector.load %arg4[%c0_7, %c0_8] : memref<3x128xf32, #tpu.memory_space<vmem>>, vector<1x128xf32>
    %cst = arith.constant dense<0.000000e+00> : vector<8xf32>
    %7 = vector.multi_reduction <add>, %1, %cst [1] : vector<8x128xf32> to vector<8xf32>
    %8 = vector.shape_cast %7 : vector<8xf32> to vector<8x1xf32>
    %cst_9 = arith.constant 1.280000e+02 : f32
    %9 = vector.broadcast %cst_9 : f32 to vector<8x1xf32>
    %10 = arith.divf %8, %9 : vector<8x1xf32>
    %11 = vector.broadcast %10 : vector<8x1xf32> to vector<8x128xf32>
    %12 = arith.subf %1, %11 : vector<8x128xf32>
    %13 = arith.mulf %12, %12 : vector<8x128xf32>
    %cst_10 = arith.constant dense<0.000000e+00> : vector<8xf32>
    %14 = vector.multi_reduction <add>, %13, %cst_10 [1] : vector<8x128xf32> to vector<8xf32>
    %15 = vector.shape_cast %14 : vector<8xf32> to vector<8x1xf32>
    %cst_11 = arith.constant 1.280000e+02 : f32
    %16 = vector.broadcast %cst_11 : f32 to vector<8x1xf32>
    %17 = arith.divf %15, %16 : vector<8x1xf32>
    %18 = vector.broadcast %10 : vector<8x1xf32> to vector<8x128xf32>
    %19 = arith.subf %1, %18 : vector<8x128xf32>
    %cst_12 = arith.constant 9.99999997E-7 : f32
    %20 = vector.broadcast %cst_12 : f32 to vector<8x1xf32>
    %21 = arith.addf %17, %20 : vector<8x1xf32>
    %22 = math.rsqrt %21 : vector<8x1xf32>
    %23 = vector.broadcast %22 : vector<8x1xf32> to vector<8x128xf32>
    %24 = arith.mulf %19, %23 : vector<8x128xf32>
    %25 = vector.broadcast %5 : vector<1x128xf32> to vector<8x128xf32>
    %26 = arith.mulf %24, %25 : vector<8x128xf32>
    %27 = vector.broadcast %6 : vector<1x128xf32> to vector<8x128xf32>
    %28 = arith.addf %26, %27 : vector<8x128xf32>
    %29 = arith.truncf %28 : vector<8x128xf32> to vector<8x128xbf16>
    %c0_13 = arith.constant 0 : index
    %c0_14 = arith.constant 0 : index
    %30 = vector.load %arg5[%c0_13, %c0_14] : memref<128x384xbf16, #tpu.memory_space<vmem>>, vector<128x384xbf16>
    %cst_15 = arith.constant dense<0.000000e+00> : vector<8x384xf32>
    %31 = tpu.matmul %29, %30, %cst_15 {dimension_numbers = #tpu.dot_dimension_numbers<[1], [0], [0], [1], [0, 0, 1, 1], [], []>} : vector<8x128xbf16>, vector<128x384xbf16>, vector<8x384xf32> -> vector<8x384xf32>
    %c0_16 = arith.constant 0 : index
    %c0_17 = arith.constant 0 : index
    %32 = vector.load %arg6[%c0_16, %c0_17] : memref<1x384xf32, #tpu.memory_space<vmem>>, vector<1x384xf32>
    %33 = vector.broadcast %32 : vector<1x384xf32> to vector<8x384xf32>
    %34 = arith.addf %31, %33 : vector<8x384xf32>
    %35 = vector.extract_strided_slice %34 {offsets = [0, 0], sizes = [8, 128], strides = [1, 1]} : vector<8x384xf32> to vector<8x128xf32>
    %36 = vector.extract_strided_slice %34 {offsets = [0, 128], sizes = [8, 128], strides = [1, 1]} : vector<8x384xf32> to vector<8x128xf32>
    %37 = vector.extract_strided_slice %34 {offsets = [0, 256], sizes = [8, 128], strides = [1, 1]} : vector<8x384xf32> to vector<8x128xf32>
    %38 = vector.extract_strided_slice %35 {offsets = [0, 0], sizes = [8, 32], strides = [1, 1]} : vector<8x128xf32> to vector<8x32xf32>
    %39 = arith.truncf %38 : vector<8x32xf32> to vector<8x32xbf16>
    %40 = vector.extract_strided_slice %36 {offsets = [0, 0], sizes = [8, 32], strides = [1, 1]} : vector<8x128xf32> to vector<8x32xf32>
    %41 = arith.truncf %40 : vector<8x32xf32> to vector<8x32xbf16>
    %42 = vector.extract_strided_slice %37 {offsets = [0, 0], sizes = [8, 32], strides = [1, 1]} : vector<8x128xf32> to vector<8x32xf32>
    %43 = arith.truncf %42 : vector<8x32xf32> to vector<8x32xbf16>
    %cst_18 = arith.constant dense<0.000000e+00> : vector<8x8xf32>
    %44 = tpu.matmul %39, %41, %cst_18 {dimension_numbers = #tpu.dot_dimension_numbers<[1], [1], [0], [0], [0, 0, 1, 0], [], []>} : vector<8x32xbf16>, vector<8x32xbf16>, vector<8x8xf32> -> vector<8x8xf32>
    %cst_19 = arith.constant 0.176776692 : f32
    %45 = vector.broadcast %cst_19 : f32 to vector<8x8xf32>
    %46 = arith.mulf %44, %45 : vector<8x8xf32>
    %cst_20 = arith.constant dense<0xFF800000> : vector<8xf32>
    %47 = vector.multi_reduction <maximumf>, %46, %cst_20 [1] : vector<8x8xf32> to vector<8xf32>
    %48 = vector.shape_cast %47 : vector<8xf32> to vector<8x1xf32>
    %49 = vector.broadcast %48 : vector<8x1xf32> to vector<8x8xf32>
    %50 = arith.subf %46, %49 : vector<8x8xf32>
    %51 = math.exp %50 : vector<8x8xf32>
    %cst_21 = arith.constant dense<0.000000e+00> : vector<8xf32>
    %52 = vector.multi_reduction <add>, %51, %cst_21 [1] : vector<8x8xf32> to vector<8xf32>
    %53 = vector.shape_cast %52 : vector<8xf32> to vector<8x1xf32>
    %54 = tpu.reciprocal %53 {approx = true} : vector<8x1xf32> -> vector<8x1xf32>
    %55 = vector.broadcast %54 : vector<8x1xf32> to vector<8x8xf32>
    %56 = arith.mulf %51, %55 : vector<8x8xf32>
    %57 = arith.truncf %56 : vector<8x8xf32> to vector<8x8xbf16>
    %cst_22 = arith.constant dense<0.000000e+00> : vector<8x32xf32>
    %58 = tpu.matmul %57, %43, %cst_22 {dimension_numbers = #tpu.dot_dimension_numbers<[1], [0], [0], [1], [0, 0, 1, 1], [], []>} : vector<8x8xbf16>, vector<8x32xbf16>, vector<8x32xf32> -> vector<8x32xf32>
    %59 = vector.extract_strided_slice %35 {offsets = [0, 32], sizes = [8, 32], strides = [1, 1]} : vector<8x128xf32> to vector<8x32xf32>
    %60 = arith.truncf %59 : vector<8x32xf32> to vector<8x32xbf16>
    %61 = vector.extract_strided_slice %36 {offsets = [0, 32], sizes = [8, 32], strides = [1, 1]} : vector<8x128xf32> to vector<8x32xf32>
    %62 = arith.truncf %61 : vector<8x32xf32> to vector<8x32xbf16>
    %63 = vector.extract_strided_slice %37 {offsets = [0, 32], sizes = [8, 32], strides = [1, 1]} : vector<8x128xf32> to vector<8x32xf32>
    %64 = arith.truncf %63 : vector<8x32xf32> to vector<8x32xbf16>
    %cst_23 = arith.constant dense<0.000000e+00> : vector<8x8xf32>
    %65 = tpu.matmul %60, %62, %cst_23 {dimension_numbers = #tpu.dot_dimension_numbers<[1], [1], [0], [0], [0, 0, 1, 0], [], []>} : vector<8x32xbf16>, vector<8x32xbf16>, vector<8x8xf32> -> vector<8x8xf32>
    %cst_24 = arith.constant 0.176776692 : f32
    %66 = vector.broadcast %cst_24 : f32 to vector<8x8xf32>
    %67 = arith.mulf %65, %66 : vector<8x8xf32>
    %cst_25 = arith.constant dense<0xFF800000> : vector<8xf32>
    %68 = vector.multi_reduction <maximumf>, %67, %cst_25 [1] : vector<8x8xf32> to vector<8xf32>
    %69 = vector.shape_cast %68 : vector<8xf32> to vector<8x1xf32>
    %70 = vector.broadcast %69 : vector<8x1xf32> to vector<8x8xf32>
    %71 = arith.subf %67, %70 : vector<8x8xf32>
    %72 = math.exp %71 : vector<8x8xf32>
    %cst_26 = arith.constant dense<0.000000e+00> : vector<8xf32>
    %73 = vector.multi_reduction <add>, %72, %cst_26 [1] : vector<8x8xf32> to vector<8xf32>
    %74 = vector.shape_cast %73 : vector<8xf32> to vector<8x1xf32>
    %75 = tpu.reciprocal %74 {approx = true} : vector<8x1xf32> -> vector<8x1xf32>
    %76 = vector.broadcast %75 : vector<8x1xf32> to vector<8x8xf32>
    %77 = arith.mulf %72, %76 : vector<8x8xf32>
    %78 = arith.truncf %77 : vector<8x8xf32> to vector<8x8xbf16>
    %cst_27 = arith.constant dense<0.000000e+00> : vector<8x32xf32>
    %79 = tpu.matmul %78, %64, %cst_27 {dimension_numbers = #tpu.dot_dimension_numbers<[1], [0], [0], [1], [0, 0, 1, 1], [], []>} : vector<8x8xbf16>, vector<8x32xbf16>, vector<8x32xf32> -> vector<8x32xf32>
    %80 = vector.extract_strided_slice %35 {offsets = [0, 64], sizes = [8, 32], strides = [1, 1]} : vector<8x128xf32> to vector<8x32xf32>
    %81 = arith.truncf %80 : vector<8x32xf32> to vector<8x32xbf16>
    %82 = vector.extract_strided_slice %36 {offsets = [0, 64], sizes = [8, 32], strides = [1, 1]} : vector<8x128xf32> to vector<8x32xf32>
    %83 = arith.truncf %82 : vector<8x32xf32> to vector<8x32xbf16>
    %84 = vector.extract_strided_slice %37 {offsets = [0, 64], sizes = [8, 32], strides = [1, 1]} : vector<8x128xf32> to vector<8x32xf32>
    %85 = arith.truncf %84 : vector<8x32xf32> to vector<8x32xbf16>
    %cst_28 = arith.constant dense<0.000000e+00> : vector<8x8xf32>
    %86 = tpu.matmul %81, %83, %cst_28 {dimension_numbers = #tpu.dot_dimension_numbers<[1], [1], [0], [0], [0, 0, 1, 0], [], []>} : vector<8x32xbf16>, vector<8x32xbf16>, vector<8x8xf32> -> vector<8x8xf32>
    %cst_29 = arith.constant 0.176776692 : f32
    %87 = vector.broadcast %cst_29 : f32 to vector<8x8xf32>
    %88 = arith.mulf %86, %87 : vector<8x8xf32>
    %cst_30 = arith.constant dense<0xFF800000> : vector<8xf32>
    %89 = vector.multi_reduction <maximumf>, %88, %cst_30 [1] : vector<8x8xf32> to vector<8xf32>
    %90 = vector.shape_cast %89 : vector<8xf32> to vector<8x1xf32>
    %91 = vector.broadcast %90 : vector<8x1xf32> to vector<8x8xf32>
    %92 = arith.subf %88, %91 : vector<8x8xf32>
    %93 = math.exp %92 : vector<8x8xf32>
    %cst_31 = arith.constant dense<0.000000e+00> : vector<8xf32>
    %94 = vector.multi_reduction <add>, %93, %cst_31 [1] : vector<8x8xf32> to vector<8xf32>
    %95 = vector.shape_cast %94 : vector<8xf32> to vector<8x1xf32>
    %96 = tpu.reciprocal %95 {approx = true} : vector<8x1xf32> -> vector<8x1xf32>
    %97 = vector.broadcast %96 : vector<8x1xf32> to vector<8x8xf32>
    %98 = arith.mulf %93, %97 : vector<8x8xf32>
    %99 = arith.truncf %98 : vector<8x8xf32> to vector<8x8xbf16>
    %cst_32 = arith.constant dense<0.000000e+00> : vector<8x32xf32>
    %100 = tpu.matmul %99, %85, %cst_32 {dimension_numbers = #tpu.dot_dimension_numbers<[1], [0], [0], [1], [0, 0, 1, 1], [], []>} : vector<8x8xbf16>, vector<8x32xbf16>, vector<8x32xf32> -> vector<8x32xf32>
    %101 = vector.extract_strided_slice %35 {offsets = [0, 96], sizes = [8, 32], strides = [1, 1]} : vector<8x128xf32> to vector<8x32xf32>
    %102 = arith.truncf %101 : vector<8x32xf32> to vector<8x32xbf16>
    %103 = vector.extract_strided_slice %36 {offsets = [0, 96], sizes = [8, 32], strides = [1, 1]} : vector<8x128xf32> to vector<8x32xf32>
    %104 = arith.truncf %103 : vector<8x32xf32> to vector<8x32xbf16>
    %105 = vector.extract_strided_slice %37 {offsets = [0, 96], sizes = [8, 32], strides = [1, 1]} : vector<8x128xf32> to vector<8x32xf32>
    %106 = arith.truncf %105 : vector<8x32xf32> to vector<8x32xbf16>
    %cst_33 = arith.constant dense<0.000000e+00> : vector<8x8xf32>
    %107 = tpu.matmul %102, %104, %cst_33 {dimension_numbers = #tpu.dot_dimension_numbers<[1], [1], [0], [0], [0, 0, 1, 0], [], []>} : vector<8x32xbf16>, vector<8x32xbf16>, vector<8x8xf32> -> vector<8x8xf32>
    %cst_34 = arith.constant 0.176776692 : f32
    %108 = vector.broadcast %cst_34 : f32 to vector<8x8xf32>
    %109 = arith.mulf %107, %108 : vector<8x8xf32>
    %cst_35 = arith.constant dense<0xFF800000> : vector<8xf32>
    %110 = vector.multi_reduction <maximumf>, %109, %cst_35 [1] : vector<8x8xf32> to vector<8xf32>
    %111 = vector.shape_cast %110 : vector<8xf32> to vector<8x1xf32>
    %112 = vector.broadcast %111 : vector<8x1xf32> to vector<8x8xf32>
    %113 = arith.subf %109, %112 : vector<8x8xf32>
    %114 = math.exp %113 : vector<8x8xf32>
    %cst_36 = arith.constant dense<0.000000e+00> : vector<8xf32>
    %115 = vector.multi_reduction <add>, %114, %cst_36 [1] : vector<8x8xf32> to vector<8xf32>
    %116 = vector.shape_cast %115 : vector<8xf32> to vector<8x1xf32>
    %117 = tpu.reciprocal %116 {approx = true} : vector<8x1xf32> -> vector<8x1xf32>
    %118 = vector.broadcast %117 : vector<8x1xf32> to vector<8x8xf32>
    %119 = arith.mulf %114, %118 : vector<8x8xf32>
    %120 = arith.truncf %119 : vector<8x8xf32> to vector<8x8xbf16>
    %cst_37 = arith.constant dense<0.000000e+00> : vector<8x32xf32>
    %121 = tpu.matmul %120, %106, %cst_37 {dimension_numbers = #tpu.dot_dimension_numbers<[1], [0], [0], [1], [0, 0, 1, 1], [], []>} : vector<8x8xbf16>, vector<8x32xbf16>, vector<8x32xf32> -> vector<8x32xf32>
    %122 = tpu.concatenate %58, %79, %100, %121 in 1 : vector<8x32xf32>, vector<8x32xf32>, vector<8x32xf32>, vector<8x32xf32> -> vector<8x128xf32>
    %123 = arith.truncf %122 : vector<8x128xf32> to vector<8x128xbf16>
    %c0_38 = arith.constant 0 : index
    %c0_39 = arith.constant 0 : index
    %124 = vector.load %arg7[%c0_38, %c0_39] : memref<128x128xbf16, #tpu.memory_space<vmem>>, vector<128x128xbf16>
    %cst_40 = arith.constant dense<0.000000e+00> : vector<8x128xf32>
    %125 = tpu.matmul %123, %124, %cst_40 {dimension_numbers = #tpu.dot_dimension_numbers<[1], [0], [0], [1], [0, 0, 1, 1], [], []>} : vector<8x128xbf16>, vector<128x128xbf16>, vector<8x128xf32> -> vector<8x128xf32>
    %126 = arith.addf %1, %125 : vector<8x128xf32>
    %c0_41 = arith.constant 0 : index
    %c0_42 = arith.constant 0 : index
    %127 = vector.load %arg8[%c0_41, %c0_42] : memref<1x128xf32, #tpu.memory_space<vmem>>, vector<1x128xf32>
    %128 = vector.broadcast %127 : vector<1x128xf32> to vector<8x128xf32>
    %129 = arith.addf %126, %128 : vector<8x128xf32>
    %c1 = arith.constant 1 : index
    %c0_43 = arith.constant 0 : index
    %130 = vector.load %arg3[%c1, %c0_43] : memref<3x128xf32, #tpu.memory_space<vmem>>, vector<1x128xf32>
    %c1_44 = arith.constant 1 : index
    %c0_45 = arith.constant 0 : index
    %131 = vector.load %arg4[%c1_44, %c0_45] : memref<3x128xf32, #tpu.memory_space<vmem>>, vector<1x128xf32>
    %cst_46 = arith.constant dense<0.000000e+00> : vector<8xf32>
    %132 = vector.multi_reduction <add>, %129, %cst_46 [1] : vector<8x128xf32> to vector<8xf32>
    %133 = vector.shape_cast %132 : vector<8xf32> to vector<8x1xf32>
    %cst_47 = arith.constant 1.280000e+02 : f32
    %134 = vector.broadcast %cst_47 : f32 to vector<8x1xf32>
    %135 = arith.divf %133, %134 : vector<8x1xf32>
    %136 = vector.broadcast %135 : vector<8x1xf32> to vector<8x128xf32>
    %137 = arith.subf %129, %136 : vector<8x128xf32>
    %138 = arith.mulf %137, %137 : vector<8x128xf32>
    %cst_48 = arith.constant dense<0.000000e+00> : vector<8xf32>
    %139 = vector.multi_reduction <add>, %138, %cst_48 [1] : vector<8x128xf32> to vector<8xf32>
    %140 = vector.shape_cast %139 : vector<8xf32> to vector<8x1xf32>
    %cst_49 = arith.constant 1.280000e+02 : f32
    %141 = vector.broadcast %cst_49 : f32 to vector<8x1xf32>
    %142 = arith.divf %140, %141 : vector<8x1xf32>
    %143 = vector.broadcast %135 : vector<8x1xf32> to vector<8x128xf32>
    %144 = arith.subf %129, %143 : vector<8x128xf32>
    %cst_50 = arith.constant 9.99999997E-7 : f32
    %145 = vector.broadcast %cst_50 : f32 to vector<8x1xf32>
    %146 = arith.addf %142, %145 : vector<8x1xf32>
    %147 = math.rsqrt %146 : vector<8x1xf32>
    %148 = vector.broadcast %147 : vector<8x1xf32> to vector<8x128xf32>
    %149 = arith.mulf %144, %148 : vector<8x128xf32>
    %150 = vector.broadcast %130 : vector<1x128xf32> to vector<8x128xf32>
    %151 = arith.mulf %149, %150 : vector<8x128xf32>
    %152 = vector.broadcast %131 : vector<1x128xf32> to vector<8x128xf32>
    %153 = arith.addf %151, %152 : vector<8x128xf32>
    %154 = arith.truncf %153 : vector<8x128xf32> to vector<8x128xbf16>
    %c0_51 = arith.constant 0 : index
    %c0_52 = arith.constant 0 : index
    %155 = vector.load %arg9[%c0_51, %c0_52] : memref<128x128xbf16, #tpu.memory_space<vmem>>, vector<128x128xbf16>
    %cst_53 = arith.constant dense<0.000000e+00> : vector<8x128xf32>
    %156 = tpu.matmul %154, %155, %cst_53 {dimension_numbers = #tpu.dot_dimension_numbers<[1], [0], [0], [1], [0, 0, 1, 1], [], []>} : vector<8x128xbf16>, vector<128x128xbf16>, vector<8x128xf32> -> vector<8x128xf32>
    %c0_54 = arith.constant 0 : index
    %c0_55 = arith.constant 0 : index
    %157 = vector.load %arg10[%c0_54, %c0_55] : memref<1x128xf32, #tpu.memory_space<vmem>>, vector<1x128xf32>
    %158 = vector.broadcast %157 : vector<1x128xf32> to vector<8x128xf32>
    %159 = arith.addf %156, %158 : vector<8x128xf32>
    %c0_56 = arith.constant 0 : index
    %c0_57 = arith.constant 0 : index
    %160 = vector.load %arg11[%c0_56, %c0_57] : memref<128x256xbf16, #tpu.memory_space<vmem>>, vector<128x256xbf16>
    %cst_58 = arith.constant dense<0.000000e+00> : vector<8x256xf32>
    %161 = tpu.matmul %4, %160, %cst_58 {dimension_numbers = #tpu.dot_dimension_numbers<[1], [0], [0], [1], [0, 0, 1, 1], [], []>} : vector<8x128xbf16>, vector<128x256xbf16>, vector<8x256xf32> -> vector<8x256xf32>
    %c0_59 = arith.constant 0 : index
    %c0_60 = arith.constant 0 : index
    %162 = vector.load %arg12[%c0_59, %c0_60] : memref<1x256xf32, #tpu.memory_space<vmem>>, vector<1x256xf32>
    %163 = vector.broadcast %162 : vector<1x256xf32> to vector<8x256xf32>
    %164 = arith.addf %161, %163 : vector<8x256xf32>
    %165 = vector.extract_strided_slice %164 {offsets = [0, 0], sizes = [8, 128], strides = [1, 1]} : vector<8x256xf32> to vector<8x128xf32>
    %166 = vector.extract_strided_slice %164 {offsets = [0, 128], sizes = [8, 128], strides = [1, 1]} : vector<8x256xf32> to vector<8x128xf32>
    %167 = vector.extract_strided_slice %159 {offsets = [0, 0], sizes = [8, 32], strides = [1, 1]} : vector<8x128xf32> to vector<8x32xf32>
    %168 = arith.truncf %167 : vector<8x32xf32> to vector<8x32xbf16>
    %169 = vector.extract_strided_slice %165 {offsets = [0, 0], sizes = [8, 32], strides = [1, 1]} : vector<8x128xf32> to vector<8x32xf32>
    %170 = arith.truncf %169 : vector<8x32xf32> to vector<8x32xbf16>
    %171 = vector.extract_strided_slice %166 {offsets = [0, 0], sizes = [8, 32], strides = [1, 1]} : vector<8x128xf32> to vector<8x32xf32>
    %172 = arith.truncf %171 : vector<8x32xf32> to vector<8x32xbf16>
    %cst_61 = arith.constant dense<0.000000e+00> : vector<8x8xf32>
    %173 = tpu.matmul %168, %170, %cst_61 {dimension_numbers = #tpu.dot_dimension_numbers<[1], [1], [0], [0], [0, 0, 1, 0], [], []>} : vector<8x32xbf16>, vector<8x32xbf16>, vector<8x8xf32> -> vector<8x8xf32>
    %cst_62 = arith.constant 0.176776692 : f32
    %174 = vector.broadcast %cst_62 : f32 to vector<8x8xf32>
    %175 = arith.mulf %173, %174 : vector<8x8xf32>
    %cst_63 = arith.constant dense<0xFF800000> : vector<8xf32>
    %176 = vector.multi_reduction <maximumf>, %175, %cst_63 [1] : vector<8x8xf32> to vector<8xf32>
    %177 = vector.shape_cast %176 : vector<8xf32> to vector<8x1xf32>
    %178 = vector.broadcast %177 : vector<8x1xf32> to vector<8x8xf32>
    %179 = arith.subf %175, %178 : vector<8x8xf32>
    %180 = math.exp %179 : vector<8x8xf32>
    %cst_64 = arith.constant dense<0.000000e+00> : vector<8xf32>
    %181 = vector.multi_reduction <add>, %180, %cst_64 [1] : vector<8x8xf32> to vector<8xf32>
    %182 = vector.shape_cast %181 : vector<8xf32> to vector<8x1xf32>
    %183 = tpu.reciprocal %182 {approx = true} : vector<8x1xf32> -> vector<8x1xf32>
    %184 = vector.broadcast %183 : vector<8x1xf32> to vector<8x8xf32>
    %185 = arith.mulf %180, %184 : vector<8x8xf32>
    %186 = arith.truncf %185 : vector<8x8xf32> to vector<8x8xbf16>
    %cst_65 = arith.constant dense<0.000000e+00> : vector<8x32xf32>
    %187 = tpu.matmul %186, %172, %cst_65 {dimension_numbers = #tpu.dot_dimension_numbers<[1], [0], [0], [1], [0, 0, 1, 1], [], []>} : vector<8x8xbf16>, vector<8x32xbf16>, vector<8x32xf32> -> vector<8x32xf32>
    %188 = vector.extract_strided_slice %159 {offsets = [0, 32], sizes = [8, 32], strides = [1, 1]} : vector<8x128xf32> to vector<8x32xf32>
    %189 = arith.truncf %188 : vector<8x32xf32> to vector<8x32xbf16>
    %190 = vector.extract_strided_slice %165 {offsets = [0, 32], sizes = [8, 32], strides = [1, 1]} : vector<8x128xf32> to vector<8x32xf32>
    %191 = arith.truncf %190 : vector<8x32xf32> to vector<8x32xbf16>
    %192 = vector.extract_strided_slice %166 {offsets = [0, 32], sizes = [8, 32], strides = [1, 1]} : vector<8x128xf32> to vector<8x32xf32>
    %193 = arith.truncf %192 : vector<8x32xf32> to vector<8x32xbf16>
    %cst_66 = arith.constant dense<0.000000e+00> : vector<8x8xf32>
    %194 = tpu.matmul %189, %191, %cst_66 {dimension_numbers = #tpu.dot_dimension_numbers<[1], [1], [0], [0], [0, 0, 1, 0], [], []>} : vector<8x32xbf16>, vector<8x32xbf16>, vector<8x8xf32> -> vector<8x8xf32>
    %cst_67 = arith.constant 0.176776692 : f32
    %195 = vector.broadcast %cst_67 : f32 to vector<8x8xf32>
    %196 = arith.mulf %194, %195 : vector<8x8xf32>
    %cst_68 = arith.constant dense<0xFF800000> : vector<8xf32>
    %197 = vector.multi_reduction <maximumf>, %196, %cst_68 [1] : vector<8x8xf32> to vector<8xf32>
    %198 = vector.shape_cast %197 : vector<8xf32> to vector<8x1xf32>
    %199 = vector.broadcast %198 : vector<8x1xf32> to vector<8x8xf32>
    %200 = arith.subf %196, %199 : vector<8x8xf32>
    %201 = math.exp %200 : vector<8x8xf32>
    %cst_69 = arith.constant dense<0.000000e+00> : vector<8xf32>
    %202 = vector.multi_reduction <add>, %201, %cst_69 [1] : vector<8x8xf32> to vector<8xf32>
    %203 = vector.shape_cast %202 : vector<8xf32> to vector<8x1xf32>
    %204 = tpu.reciprocal %203 {approx = true} : vector<8x1xf32> -> vector<8x1xf32>
    %205 = vector.broadcast %204 : vector<8x1xf32> to vector<8x8xf32>
    %206 = arith.mulf %201, %205 : vector<8x8xf32>
    %207 = arith.truncf %206 : vector<8x8xf32> to vector<8x8xbf16>
    %cst_70 = arith.constant dense<0.000000e+00> : vector<8x32xf32>
    %208 = tpu.matmul %207, %193, %cst_70 {dimension_numbers = #tpu.dot_dimension_numbers<[1], [0], [0], [1], [0, 0, 1, 1], [], []>} : vector<8x8xbf16>, vector<8x32xbf16>, vector<8x32xf32> -> vector<8x32xf32>
    %209 = vector.extract_strided_slice %159 {offsets = [0, 64], sizes = [8, 32], strides = [1, 1]} : vector<8x128xf32> to vector<8x32xf32>
    %210 = arith.truncf %209 : vector<8x32xf32> to vector<8x32xbf16>
    %211 = vector.extract_strided_slice %165 {offsets = [0, 64], sizes = [8, 32], strides = [1, 1]} : vector<8x128xf32> to vector<8x32xf32>
    %212 = arith.truncf %211 : vector<8x32xf32> to vector<8x32xbf16>
    %213 = vector.extract_strided_slice %166 {offsets = [0, 64], sizes = [8, 32], strides = [1, 1]} : vector<8x128xf32> to vector<8x32xf32>
    %214 = arith.truncf %213 : vector<8x32xf32> to vector<8x32xbf16>
    %cst_71 = arith.constant dense<0.000000e+00> : vector<8x8xf32>
    %215 = tpu.matmul %210, %212, %cst_71 {dimension_numbers = #tpu.dot_dimension_numbers<[1], [1], [0], [0], [0, 0, 1, 0], [], []>} : vector<8x32xbf16>, vector<8x32xbf16>, vector<8x8xf32> -> vector<8x8xf32>
    %cst_72 = arith.constant 0.176776692 : f32
    %216 = vector.broadcast %cst_72 : f32 to vector<8x8xf32>
    %217 = arith.mulf %215, %216 : vector<8x8xf32>
    %cst_73 = arith.constant dense<0xFF800000> : vector<8xf32>
    %218 = vector.multi_reduction <maximumf>, %217, %cst_73 [1] : vector<8x8xf32> to vector<8xf32>
    %219 = vector.shape_cast %218 : vector<8xf32> to vector<8x1xf32>
    %220 = vector.broadcast %219 : vector<8x1xf32> to vector<8x8xf32>
    %221 = arith.subf %217, %220 : vector<8x8xf32>
    %222 = math.exp %221 : vector<8x8xf32>
    %cst_74 = arith.constant dense<0.000000e+00> : vector<8xf32>
    %223 = vector.multi_reduction <add>, %222, %cst_74 [1] : vector<8x8xf32> to vector<8xf32>
    %224 = vector.shape_cast %223 : vector<8xf32> to vector<8x1xf32>
    %225 = tpu.reciprocal %224 {approx = true} : vector<8x1xf32> -> vector<8x1xf32>
    %226 = vector.broadcast %225 : vector<8x1xf32> to vector<8x8xf32>
    %227 = arith.mulf %222, %226 : vector<8x8xf32>
    %228 = arith.truncf %227 : vector<8x8xf32> to vector<8x8xbf16>
    %cst_75 = arith.constant dense<0.000000e+00> : vector<8x32xf32>
    %229 = tpu.matmul %228, %214, %cst_75 {dimension_numbers = #tpu.dot_dimension_numbers<[1], [0], [0], [1], [0, 0, 1, 1], [], []>} : vector<8x8xbf16>, vector<8x32xbf16>, vector<8x32xf32> -> vector<8x32xf32>
    %230 = vector.extract_strided_slice %159 {offsets = [0, 96], sizes = [8, 32], strides = [1, 1]} : vector<8x128xf32> to vector<8x32xf32>
    %231 = arith.truncf %230 : vector<8x32xf32> to vector<8x32xbf16>
    %232 = vector.extract_strided_slice %165 {offsets = [0, 96], sizes = [8, 32], strides = [1, 1]} : vector<8x128xf32> to vector<8x32xf32>
    %233 = arith.truncf %232 : vector<8x32xf32> to vector<8x32xbf16>
    %234 = vector.extract_strided_slice %166 {offsets = [0, 96], sizes = [8, 32], strides = [1, 1]} : vector<8x128xf32> to vector<8x32xf32>
    %235 = arith.truncf %234 : vector<8x32xf32> to vector<8x32xbf16>
    %cst_76 = arith.constant dense<0.000000e+00> : vector<8x8xf32>
    %236 = tpu.matmul %231, %233, %cst_76 {dimension_numbers = #tpu.dot_dimension_numbers<[1], [1], [0], [0], [0, 0, 1, 0], [], []>} : vector<8x32xbf16>, vector<8x32xbf16>, vector<8x8xf32> -> vector<8x8xf32>
    %cst_77 = arith.constant 0.176776692 : f32
    %237 = vector.broadcast %cst_77 : f32 to vector<8x8xf32>
    %238 = arith.mulf %236, %237 : vector<8x8xf32>
    %cst_78 = arith.constant dense<0xFF800000> : vector<8xf32>
    %239 = vector.multi_reduction <maximumf>, %238, %cst_78 [1] : vector<8x8xf32> to vector<8xf32>
    %240 = vector.shape_cast %239 : vector<8xf32> to vector<8x1xf32>
    %241 = vector.broadcast %240 : vector<8x1xf32> to vector<8x8xf32>
    %242 = arith.subf %238, %241 : vector<8x8xf32>
    %243 = math.exp %242 : vector<8x8xf32>
    %cst_79 = arith.constant dense<0.000000e+00> : vector<8xf32>
    %244 = vector.multi_reduction <add>, %243, %cst_79 [1] : vector<8x8xf32> to vector<8xf32>
    %245 = vector.shape_cast %244 : vector<8xf32> to vector<8x1xf32>
    %246 = tpu.reciprocal %245 {approx = true} : vector<8x1xf32> -> vector<8x1xf32>
    %247 = vector.broadcast %246 : vector<8x1xf32> to vector<8x8xf32>
    %248 = arith.mulf %243, %247 : vector<8x8xf32>
    %249 = arith.truncf %248 : vector<8x8xf32> to vector<8x8xbf16>
    %cst_80 = arith.constant dense<0.000000e+00> : vector<8x32xf32>
    %250 = tpu.matmul %249, %235, %cst_80 {dimension_numbers = #tpu.dot_dimension_numbers<[1], [0], [0], [1], [0, 0, 1, 1], [], []>} : vector<8x8xbf16>, vector<8x32xbf16>, vector<8x32xf32> -> vector<8x32xf32>
    %251 = tpu.concatenate %187, %208, %229, %250 in 1 : vector<8x32xf32>, vector<8x32xf32>, vector<8x32xf32>, vector<8x32xf32> -> vector<8x128xf32>
    %252 = arith.truncf %251 : vector<8x128xf32> to vector<8x128xbf16>
    %c0_81 = arith.constant 0 : index
    %c0_82 = arith.constant 0 : index
    %253 = vector.load %arg13[%c0_81, %c0_82] : memref<128x128xbf16, #tpu.memory_space<vmem>>, vector<128x128xbf16>
    %cst_83 = arith.constant dense<0.000000e+00> : vector<8x128xf32>
    %254 = tpu.matmul %252, %253, %cst_83 {dimension_numbers = #tpu.dot_dimension_numbers<[1], [0], [0], [1], [0, 0, 1, 1], [], []>} : vector<8x128xbf16>, vector<128x128xbf16>, vector<8x128xf32> -> vector<8x128xf32>
    %255 = arith.addf %129, %254 : vector<8x128xf32>
    %c0_84 = arith.constant 0 : index
    %c0_85 = arith.constant 0 : index
    %256 = vector.load %arg14[%c0_84, %c0_85] : memref<1x128xf32, #tpu.memory_space<vmem>>, vector<1x128xf32>
    %257 = vector.broadcast %256 : vector<1x128xf32> to vector<8x128xf32>
    %258 = arith.addf %255, %257 : vector<8x128xf32>
    %c2 = arith.constant 2 : index
    %c0_86 = arith.constant 0 : index
    %259 = vector.load %arg3[%c2, %c0_86] : memref<3x128xf32, #tpu.memory_space<vmem>>, vector<1x128xf32>
    %c2_87 = arith.constant 2 : index
    %c0_88 = arith.constant 0 : index
    %260 = vector.load %arg4[%c2_87, %c0_88] : memref<3x128xf32, #tpu.memory_space<vmem>>, vector<1x128xf32>
    %cst_89 = arith.constant dense<0.000000e+00> : vector<8xf32>
    %261 = vector.multi_reduction <add>, %258, %cst_89 [1] : vector<8x128xf32> to vector<8xf32>
    %262 = vector.shape_cast %261 : vector<8xf32> to vector<8x1xf32>
    %cst_90 = arith.constant 1.280000e+02 : f32
    %263 = vector.broadcast %cst_90 : f32 to vector<8x1xf32>
    %264 = arith.divf %262, %263 : vector<8x1xf32>
    %265 = vector.broadcast %264 : vector<8x1xf32> to vector<8x128xf32>
    %266 = arith.subf %258, %265 : vector<8x128xf32>
    %267 = arith.mulf %266, %266 : vector<8x128xf32>
    %cst_91 = arith.constant dense<0.000000e+00> : vector<8xf32>
    %268 = vector.multi_reduction <add>, %267, %cst_91 [1] : vector<8x128xf32> to vector<8xf32>
    %269 = vector.shape_cast %268 : vector<8xf32> to vector<8x1xf32>
    %cst_92 = arith.constant 1.280000e+02 : f32
    %270 = vector.broadcast %cst_92 : f32 to vector<8x1xf32>
    %271 = arith.divf %269, %270 : vector<8x1xf32>
    %272 = vector.broadcast %264 : vector<8x1xf32> to vector<8x128xf32>
    %273 = arith.subf %258, %272 : vector<8x128xf32>
    %cst_93 = arith.constant 9.99999997E-7 : f32
    %274 = vector.broadcast %cst_93 : f32 to vector<8x1xf32>
    %275 = arith.addf %271, %274 : vector<8x1xf32>
    %276 = math.rsqrt %275 : vector<8x1xf32>
    %277 = vector.broadcast %276 : vector<8x1xf32> to vector<8x128xf32>
    %278 = arith.mulf %273, %277 : vector<8x128xf32>
    %279 = vector.broadcast %259 : vector<1x128xf32> to vector<8x128xf32>
    %280 = arith.mulf %278, %279 : vector<8x128xf32>
    %281 = vector.broadcast %260 : vector<1x128xf32> to vector<8x128xf32>
    %282 = arith.addf %280, %281 : vector<8x128xf32>
    %283 = arith.truncf %282 : vector<8x128xf32> to vector<8x128xbf16>
    %c0_94 = arith.constant 0 : index
    %c0_95 = arith.constant 0 : index
    %284 = vector.load %arg15[%c0_94, %c0_95] : memref<128x256xbf16, #tpu.memory_space<vmem>>, vector<128x256xbf16>
    %cst_96 = arith.constant dense<0.000000e+00> : vector<8x256xf32>
    %285 = tpu.matmul %283, %284, %cst_96 {dimension_numbers = #tpu.dot_dimension_numbers<[1], [0], [0], [1], [0, 0, 1, 1], [], []>} : vector<8x128xbf16>, vector<128x256xbf16>, vector<8x256xf32> -> vector<8x256xf32>
    %c0_97 = arith.constant 0 : index
    %c0_98 = arith.constant 0 : index
    %286 = vector.load %arg16[%c0_97, %c0_98] : memref<1x256xf32, #tpu.memory_space<vmem>>, vector<1x256xf32>
    %287 = vector.broadcast %286 : vector<1x256xf32> to vector<8x256xf32>
    %288 = arith.addf %285, %287 : vector<8x256xf32>
    %cst_99 = arith.constant 0.000000e+00 : f32
    %289 = vector.broadcast %cst_99 : f32 to vector<8x256xf32>
    %290 = arith.maximumf %288, %289 : vector<8x256xf32>
    %291 = arith.truncf %290 : vector<8x256xf32> to vector<8x256xbf16>
    %c0_100 = arith.constant 0 : index
    %c0_101 = arith.constant 0 : index
    %292 = vector.load %arg17[%c0_100, %c0_101] : memref<256x128xbf16, #tpu.memory_space<vmem>>, vector<256x128xbf16>
    %cst_102 = arith.constant dense<0.000000e+00> : vector<8x128xf32>
    %293 = tpu.matmul %291, %292, %cst_102 {dimension_numbers = #tpu.dot_dimension_numbers<[1], [0], [0], [1], [0, 0, 1, 1], [], []>} : vector<8x256xbf16>, vector<256x128xbf16>, vector<8x128xf32> -> vector<8x128xf32>
    %294 = arith.addf %258, %293 : vector<8x128xf32>
    %c0_103 = arith.constant 0 : index
    %c0_104 = arith.constant 0 : index
    %295 = vector.load %arg18[%c0_103, %c0_104] : memref<1x128xf32, #tpu.memory_space<vmem>>, vector<1x128xf32>
    %296 = vector.broadcast %295 : vector<1x128xf32> to vector<8x128xf32>
    %297 = arith.addf %294, %296 : vector<8x128xf32>
    %c0_105 = arith.constant 0 : index
    %c0_106 = arith.constant 0 : index
    %c0_107 = arith.constant 0 : index
    %298 = vector.load %arg19[%c0_105, %c0_106, %c0_107] : memref<1x8x128xf32, #tpu.memory_space<vmem>>, vector<1x8x128xf32>
    %299 = vector.shape_cast %298 : vector<1x8x128xf32> to vector<8x128xf32>
    %300 = vector.shape_cast %297 : vector<8x128xf32> to vector<1x8x128xf32>
    tpu.vector_store %arg19[%c0_105, %c0_106, %c0_107], %300 {strides = array<i32>} : memref<1x8x128xf32, #tpu.memory_space<vmem>>, vector<1x8x128xf32>,
    return
  }
  func.func @transform_0(%arg0: i32) -> (i32, i32, i32) {
    %c0_i32 = arith.constant 0 : i32
    %c0_i32_0 = arith.constant 0 : i32
    %c0_i32_1 = arith.constant 0 : i32
    return %arg0, %c0_i32, %c0_i32_0 : i32, i32, i32
  }
  func.func @transform_1(%arg0: i32) -> (i32, i32, i32) {
    %c0_i32 = arith.constant 0 : i32
    %c0_i32_0 = arith.constant 0 : i32
    %c0_i32_1 = arith.constant 0 : i32
    return %arg0, %c0_i32, %c0_i32_0 : i32, i32, i32
  }
  func.func @transform_2(%arg0: i32) -> (i32, i32) {
    %c0_i32 = arith.constant 0 : i32
    %c0_i32_0 = arith.constant 0 : i32
    %c0_i32_1 = arith.constant 0 : i32
    return %c0_i32, %c0_i32_0 : i32, i32
  }
  func.func @transform_3(%arg0: i32) -> (i32, i32) {
    %c0_i32 = arith.constant 0 : i32
    %c0_i32_0 = arith.constant 0 : i32
    %c0_i32_1 = arith.constant 0 : i32
    return %c0_i32, %c0_i32_0 : i32, i32
  }
  func.func @transform_4(%arg0: i32) -> (i32, i32) {
    %c0_i32 = arith.constant 0 : i32
    %c0_i32_0 = arith.constant 0 : i32
    %c0_i32_1 = arith.constant 0 : i32
    return %c0_i32, %c0_i32_0 : i32, i32
  }
  func.func @transform_5(%arg0: i32) -> (i32, i32) {
    %c0_i32 = arith.constant 0 : i32
    %c0_i32_0 = arith.constant 0 : i32
    %c0_i32_1 = arith.constant 0 : i32
    return %c0_i32, %c0_i32_0 : i32, i32
  }
  func.func @transform_6(%arg0: i32) -> (i32, i32) {
    %c0_i32 = arith.constant 0 : i32
    %c0_i32_0 = arith.constant 0 : i32
    %c0_i32_1 = arith.constant 0 : i32
    return %c0_i32, %c0_i32_0 : i32, i32
  }
  func.func @transform_7(%arg0: i32) -> (i32, i32) {
    %c0_i32 = arith.constant 0 : i32
    %c0_i32_0 = arith.constant 0 : i32
    %c0_i32_1 = arith.constant 0 : i32
    return %c0_i32, %c0_i32_0 : i32, i32
  }
  func.func @transform_8(%arg0: i32) -> (i32, i32) {
    %c0_i32 = arith.constant 0 : i32
    %c0_i32_0 = arith.constant 0 : i32
    %c0_i32_1 = arith.constant 0 : i32
    return %c0_i32, %c0_i32_0 : i32, i32
  }
  func.func @transform_9(%arg0: i32) -> (i32, i32) {
    %c0_i32 = arith.constant 0 : i32
    %c0_i32_0 = arith.constant 0 : i32
    %c0_i32_1 = arith.constant 0 : i32
    return %c0_i32, %c0_i32_0 : i32, i32
  }
  func.func @transform_10(%arg0: i32) -> (i32, i32) {
    %c0_i32 = arith.constant 0 : i32
    %c0_i32_0 = arith.constant 0 : i32
    %c0_i32_1 = arith.constant 0 : i32
    return %c0_i32, %c0_i32_0 : i32, i32
  }
  func.func @transform_11(%arg0: i32) -> (i32, i32) {
    %c0_i32 = arith.constant 0 : i32
    %c0_i32_0 = arith.constant 0 : i32
    %c0_i32_1 = arith.constant 0 : i32
    return %c0_i32, %c0_i32_0 : i32, i32
  }
  func.func @transform_12(%arg0: i32) -> (i32, i32) {
    %c0_i32 = arith.constant 0 : i32
    %c0_i32_0 = arith.constant 0 : i32
    %c0_i32_1 = arith.constant 0 : i32
    return %c0_i32, %c0_i32_0 : i32, i32
  }
  func.func @transform_13(%arg0: i32) -> (i32, i32) {
    %c0_i32 = arith.constant 0 : i32
    %c0_i32_0 = arith.constant 0 : i32
    %c0_i32_1 = arith.constant 0 : i32
    return %c0_i32, %c0_i32_0 : i32, i32
  }
  func.func @transform_14(%arg0: i32) -> (i32, i32) {
    %c0_i32 = arith.constant 0 : i32
    %c0_i32_0 = arith.constant 0 : i32
    %c0_i32_1 = arith.constant 0 : i32
    return %c0_i32, %c0_i32_0 : i32, i32
  }
  func.func @transform_15(%arg0: i32) -> (i32, i32) {
    %c0_i32 = arith.constant 0 : i32
    %c0_i32_0 = arith.constant 0 : i32
    %c0_i32_1 = arith.constant 0 : i32
    return %c0_i32, %c0_i32_0 : i32, i32
  }
  func.func @transform_16(%arg0: i32) -> (i32, i32) {
    %c0_i32 = arith.constant 0 : i32
    %c0_i32_0 = arith.constant 0 : i32
    %c0_i32_1 = arith.constant 0 : i32
    return %c0_i32, %c0_i32_0 : i32, i32
  }
  func.func @transform_17(%arg0: i32) -> (i32, i32) {
    %c0_i32 = arith.constant 0 : i32
    %c0_i32_0 = arith.constant 0 : i32
    %c0_i32_1 = arith.constant 0 : i32
    return %c0_i32, %c0_i32_0 : i32, i32
  }
  func.func @transform_18(%arg0: i32) -> (i32, i32, i32) {
    %c0_i32 = arith.constant 0 : i32
    %c0_i32_0 = arith.constant 0 : i32
    %c0_i32_1 = arith.constant 0 : i32
    return %arg0, %c0_i32, %c0_i32_0 : i32, i32, i32
  }
}

</mosaic_0001>

<bundles_post_ra>
// kernel: decoder_layer_forward.1
= control target key start
LH: loop header
LB: loop body
LE: loop exit
PB: predicated region body
PF: predicated region fallthrough
CT: control target
= control target key end

     0   :  { %s3921_s0 = inlined_call_operand.hbm [shape: f32[2,8,128], index: 0, kind: input, shape index: {}, may-alias: {0,18}]   ;;  %s3922_s1 = inlined_call_operand.vmem [shape: f32[2,8,128], index: 1, kind: input, shape index: {}]   ;;  %s3923_s2 = inlined_call_operand.vmem [shape: f32[3,128], index: 2, kind: input, shape index: {}]   ;;  %s3924_s3 = inlined_call_operand.vmem [shape: f32[3,128], index: 3, kind: input, shape index: {}]   ;;  %s3925_s4 = inlined_call_operand.hbm [shape: bf16[128,384], index: 4, kind: input, shape index: {}]   ;;  %s3926_s5 = inlined_call_operand.vmem [shape: f32[1,384], index: 5, kind: input, shape index: {}]   ;;  %s3927_s6 = inlined_call_operand.hbm [shape: bf16[128,128], index: 6, kind: input, shape index: {}]   ;;  %s3928_s7 = inlined_call_operand.vmem [shape: f32[1,128], index: 7, kind: input, shape index: {}]   ;;  %s3929_s8 = inlined_call_operand.hbm [shape: bf16[128,128], index: 8, kind: input, shape index: {}]   ;;  %s3930_s9 = inlined_call_operand.vmem [shape: f32[1,128], index: 9, kind: input, shape index: {}]   ;;  %s3931_s10 = inlined_call_operand.hbm [shape: bf16[128,256], index: 10, kind: input, shape index: {}]   ;;  %s3932_s11 = inlined_call_operand.vmem [shape: f32[1,256], index: 11, kind: input, shape index: {}]   ;;  %s3933_s12 = inlined_call_operand.hbm [shape: bf16[128,128], index: 12, kind: input, shape index: {}]   ;;  %s3934_s13 = inlined_call_operand.vmem [shape: f32[1,128], index: 13, kind: input, shape index: {}]   ;;  %s3935_s14 = inlined_call_operand.hbm [shape: bf16[128,256], index: 14, kind: input, shape index: {}]   ;;  %s3936_s15 = inlined_call_operand.vmem [shape: f32[1,256], index: 15, kind: input, shape index: {}]   ;;  %s3937_s16 = inlined_call_operand.hbm [shape: bf16[256,128], index: 16, kind: input, shape index: {}]   ;;  %s3938_s17 = inlined_call_operand.hbm [shape: f32[1,128], index: 17, kind: input, shape index: {}]   ;;  %s3939_s18 = inlined_call_operand.hbm [shape: f32[2,8,128], index: 18, kind: output, shape index: {}, may-alias: {0,18}]  }
   0x1   :  { %3943 = sst [smem:[#allocation24_spill]] %s3921_s0 }
   0x2   :  { %3944 = sst [smem:[#allocation25_spill]] %s3922_s1 }
   0x3   :  { %3945 = sst [smem:[#allocation26_spill]] %s3923_s2 }
   0x4   :  { %3946 = sst [smem:[#allocation27_spill]] %s3925_s4 }
   0x5   :  { %3947 = sst [smem:[#allocation28_spill]] %s3927_s6 }
   0x6   :  { %3948 = sst [smem:[#allocation29_spill]] %s3928_s7 }
   0x7   :  { %3949 = sst [smem:[#allocation30_spill]] %s3929_s8 }
   0x8   :  { %3950 = sst [smem:[#allocation31_spill]] %s3930_s9 }
   0x9   :  { %3951 = sst [smem:[#allocation32_spill]] %s3931_s10 }
   0xa   :  { %3952 = sst [smem:[#allocation33_spill]] %s3932_s11 }
   0xb   :  { %3953 = sst [smem:[#allocation34_spill]] %s3933_s12 }
   0xc   :  { %3954 = sst [smem:[#allocation35_spill]] %s3934_s13 }
   0xd   :  { %3955 = sst [smem:[#allocation36_spill]] %s3936_s15 }
   0xe   :  { %3956 = sst [smem:[#allocation37_spill]] %s3939_s18 }
   0xf   :  { %23 = vsyncpa [#allocation3], 0 }
  0x10   :  { %25 = vsyncpa [#allocation3 + $0x1], 0 }
  0x11   :  { %26 = vsyncpa [#allocation6], 0 }
  0x12   :  { %27 = vsyncpa [#allocation9], 0 }
  0x13   :  { %28 = vsyncpa [#allocation12], 0 }
  0x14   :  { %29 = vsyncpa [#allocation15], 0 }
  0x15   :  { %30 = vsyncpa [#allocation4], 0 }
  0x16   :  { %32 = vsyncpa [#allocation4 + $0x1], 0  ;;  %s3553_s27 = smov 0   ;;  %s3555_s28 = smov 0  }
  0x17   :  { %s3557_s29 = smov 0   ;;  %s3559_s30 = smov 0  }
  0x18 LB: > { %s3957_s4 = sld [smem:[#allocation27_spill]]  ;;  %s3577_s20 = sadd.s32 4294967295, %s3438_s30   ;;  %s3438_s30 = sphi %s3559_s30, %s3982_s30   ;;  %s3434_s29 = sphi %s3557_s29, %s3981_s29   ;;  %s3430_s28 = sphi %s3555_s28, %s3980_s28   ;;  %s3426_s27 = sphi %s3553_s27, %s3979_s27  }
  0x19   : > { %p2375_p0 = scmp.ge.s32.totalorder %s3438_s30, 1  ;;  %p59_p1 = scmp.eq.s32.totalorder %s3577_s20, 0 }
  0x1a   : > { %p457_p2 = scmp.lt.s32.totalorder %s3438_s30, 3  ;;  %s3440_s22 = smov [#allocation5]  }
  0x1b   : > { %s476_s2 = sshll.u32 %s3440_s22, 4  ;;  %s3960_s8 = sld [smem:[#allocation30_spill]]  ;;  %s477_s2 = int_to_ptr.vmem [resolvable:$true] %s476_s2 }
  0x1c   : > { %p3582_p3 = pnand %p2375_p0, %p457_p2  ;;  %s3441_s0 = smov 192  }
  0x1d   : > { %s3442_s19 = smov 12   ;;  %s3443_s22 = smov [#allocation8]  }
  0x1e   : > { %s474_s1 = sshll.u32 %s3957_s4, 4  ;;  %p2935_p4 = pneg %p3582_p3  ;;  %s475_s1 = int_to_ptr.hbm [resolvable:$true] %s474_s1 }
  0x1f   : > { %s510_s4 = sshll.u32 %s3443_s22, 4  ;;  %s3961_s12 = sld [smem:[#allocation34_spill]]  ;;  %s511_s4 = int_to_ptr.vmem [resolvable:$true] %s510_s4 }
  0x20   : > { %p3591_p6 = pnand %p2935_p4, %p59_p1  ;;  %s3444_s9 = smov 64  }
  0x21   : > { %s508_s26 = sshll.u32 %s3960_s8, 4  ;;  %s3445_s24 = smov 4   ;;  %s509_s26 = int_to_ptr.hbm [resolvable:$true] %s508_s26 }
  0x22   : > { %2938 = dma.hbm_to_vmem [thread:$0]  (!%p3591_p6), %s475_s1, 3072, %s477_s2, [#allocation6], %s3441_s0, %s3441_s0, %s3442_s19  }
  0x23   : > { %2944 = dma.hbm_to_vmem [thread:$0]  (!%p3591_p6), %s509_s26, 1024, %s511_s4, [#allocation9], %s3444_s9, %s3444_s9, %s3445_s24  }
  0x24   : > { %s576_s11 = sshll.u32 %s3937_s16, 4  ;;  %s3446_s7 = smov [#allocation11]   ;;  %s577_s11 = int_to_ptr.hbm [resolvable:$true] %s576_s11 }
  0x25   : > { %s542_s13 = sshll.u32 %s3961_s12, 4  ;;  %s544_s1 = sshll.u32 %s3446_s7, 4  ;;  %s543_s13 = int_to_ptr.hbm [resolvable:$true] %s542_s13  ;;  %s545_s1 = int_to_ptr.vmem [resolvable:$true] %s544_s1 }
  0x26   : > { %2950 = dma.hbm_to_vmem [thread:$0]  (!%p3591_p6), %s543_s13, 1024, %s545_s1, [#allocation12], %s3444_s9, %s3444_s9, %s3445_s24  }
  0x27   : > { %s3447_s15 = smov [#allocation14]   ;;  %s3962_s6 = sld [smem:[#allocation28_spill]] }
  0x28   : > { %s578_s18 = sshll.u32 %s3447_s15, 4  ;;  %s3963_s10 = sld [smem:[#allocation32_spill]]  ;;  %s579_s18 = int_to_ptr.vmem [resolvable:$true] %s578_s18 }
  0x29   : > { %2956 = dma.hbm_to_vmem [thread:$0]  (!%p3591_p6), %s577_s11, 2048, %s579_s18, [#allocation15], %s3444_s9, %s3444_s9, %s3445_s24  }
  0x2a   : > { %s3448_s7 = smov [#allocation7]   ;;  %s3449_s13 = smov [#allocation10]  }
  0x2b   : > { %s493_s22 = sshll.u32 %s3448_s7, 4  ;;  %s527_s25 = sshll.u32 %s3449_s13, 4  ;;  %s494_s22 = int_to_ptr.vmem [resolvable:$true] %s493_s22  ;;  %s528_s25 = int_to_ptr.vmem [resolvable:$true] %s527_s25 }
  0x2c   : > { %s3450_s1 = smov 128   ;;  %s3451_s15 = smov 8  }
  0x2d   : > { %s491_s19 = sshll.u32 %s3962_s6, 4  ;;  %s559_s2 = sshll.u32 %s3935_s14, 4  ;;  %s492_s19 = int_to_ptr.hbm [resolvable:$true] %s491_s19  ;;  %s560_s2 = int_to_ptr.hbm [resolvable:$true] %s559_s2 }
  0x2e   : > { %s525_s26 = sshll.u32 %s3963_s10, 4  ;;  %s591_s4 = sshll.u32 %s3938_s17, 4  ;;  %s526_s26 = int_to_ptr.hbm [resolvable:$true] %s525_s26  ;;  %s592_s4 = int_to_ptr.hbm [resolvable:$true] %s591_s4 }
  0x2f   : > { %2941 = dma.hbm_to_vmem [thread:$0]  (!%p3591_p6), %s492_s19, 1024, %s494_s22, [#allocation6], %s3444_s9, %s3444_s9, %s3445_s24  }
  0x30   : > { %2947 = dma.hbm_to_vmem [thread:$0]  (!%p3591_p6), %s526_s26, 2048, %s528_s25, [#allocation9], %s3450_s1, %s3450_s1, %s3451_s15  }
  0x31   : > { %s3452_s9 = smov [#allocation13]   ;;  %s3453_s8 = smov [#allocation16]  }
  0x32   : > { %s561_s24 = sshll.u32 %s3452_s9, 4  ;;  %s593_s26 = sshll.u32 %s3453_s8, 4  ;;  %s562_s24 = int_to_ptr.vmem [resolvable:$true] %s561_s24  ;;  %s594_s26 = int_to_ptr.vmem [resolvable:$true] %s593_s26 }
  0x33   : > { %2953 = dma.hbm_to_vmem [thread:$0]  (!%p3591_p6), %s560_s2, 2048, %s562_s24, [#allocation12], %s3450_s1, %s3450_s1, %s3451_s15  }
  0x34   : > { %2959 = dma.hbm_to_vmem [thread:$0]  (!%p3591_p6), %s592_s4, 16, %s594_s26, [#allocation15]  }
  0x35   : > { %s2374_s7 = sadd.s32 4294967294, %s3438_s30   ;;  %s3634_s22 = sadd.s32 1, %s3438_s30  }
  0x36   : > { %s42_s13 = ssub.s32 %s3438_s30, %s3634_s22  ;;  %s45_s25 = sadd.s32 1, %s3434_s29 }
  0x37   : > { %p43_p7 = scmp.eq.s32.totalorder %s42_s13, 0  ;;  %p52_p8 = scmp.ne.s32.totalorder %s3434_s29, %s3430_s28 }
  0x38   : > { %p53_p9 = scmp.eq.s32.totalorder %s3438_s30, 0  ;;  %p58_p10 = scmp.ne.s32.totalorder %s3430_s28, %s3426_s27 }
  0x39   : > { %s3645_s1 = scalar_select %p43_p7, %s3434_s29, %s45_s25  }
  0x3a   : > { %p3647_p11 = por %p53_p9, %p52_p8  ;;  %p3653_p12 = por %p59_p1, %p58_p10 }
  0x3b   : > { %p444_p13 = scmp.eq.s32.totalorder %s3577_s20, 1  ;;  %p450_p0 = scmp.eq.s32.totalorder %s2374_s7, 1 }
  0x3c   : > { %p2976_p2 = scmp.lt.s32.totalorder %s3438_s30, 2  ;;  %s604_s11 = sand.u32 1, %s3434_s29  }
  0x3d   : > { %p3660_p4 = por %p444_p13, %p52_p8  ;;  %p3664_p6 = por %p450_p0, %p58_p10 }
  0x3e   : > { %s2385_s9 = sshll.u32 %s604_s11, 3  ;;  %s2386_s24 = sshll.u32 %s3438_s30, 3 }
  0x3f   : > { %s3968_s4 = sld [smem:[#allocation24_spill]]  ;;  %s608_s26 = scalar_lea.vmem [#allocation2], %s2385_s9 }
  0x40   : > { %s616_s13 = sshll.u32 %s608_s26, 4  ;;  %p3674_p7 = pnand %p2976_p2, %p3647_p11  ;;  %s617_s13 = int_to_ptr.vmem [resolvable:$true] %s616_s13 }
  0x41   : > { %s605_s6 = scalar_lea.sflag [#allocation3], %s604_s11 }
  0x42   : > { %p3330_p9 = pneg %p3674_p7 }
  0x45   : > { %s612_s8 = scalar_lea.hbm %s3968_s4, %s2386_s24  ;;  %s3333_s0 = scalar_lea.hbm %s3968_s4, 16 }
  0x46   : > { %s614_s25 = sshll.u32 %s612_s8, 4  ;;  %s615_s25 = int_to_ptr.hbm [resolvable:$true] %s614_s25 }
  0x47   : > { %s3326_s10 = sshra.s32 %s615_s25, 4  ;;  %s3327_s10 = int_to_ptr.hbm [resolvable:$true] %s3326_s10 }
  0x48   : > { %s3328_s12 = scalar_lea.hbm %s3327_s10, 8  ;;  %p3334_p11 = scmp.lt.s32.totalorder %s3327_s10, %s3968_s4 }
  0x49   : > { %p3329_p8 = scmp.ne.s32.totalorder %s3327_s10, %s3328_s12  ;;  %p3335_p0 = scmp.lt.s32.totalorder %s3333_s0, %s3328_s12 }
  0x4b   : > { %p3331_p10 = pnand %p3330_p9, %p3329_p8  ;;  %p3336_p2 = por %p3335_p0, %p3334_p11 }
  0x4d   : > { %p3332_p13 = pneg %p3331_p10 }
  0x4f   : > { %p3337_p5 = pnand %p3336_p2, %p3332_p13 }
  0x51   : > { %3340 = shalt.err (!%p3337_p5)
}
  0x52   : > { %2963 = dma.hbm_to_vmem [thread:$0]  (!%p3674_p7), %s615_s25, 128, %s617_s13, %s605_s6  }
  0x53   : > { %632 = sbr.rel (%p3582_p3) target bundleno = 3515 (0xdbb), region = 92  ;;  %s3691_s11 = sand.u32 (!%p3582_p3), 1, %s3430_s28  }
  0x54   : > { %s2388_s8 = sshll.u32 (!%p3582_p3), %s3691_s11, 3  ;;  %s635_s26 = scalar_lea.sflag (!%p3582_p3), [#allocation3], %s3691_s11 }
  0x55   : > { %s638_s10 = scalar_lea.vmem (!%p3582_p3), [#allocation2], %s2388_s8 }
  0x58   : > { %3401 = dma.done.wait (%p3653_p12), %s635_s26, 128  }
  0x59   : > { %3403 = vsyncadd (%p3653_p12), %s635_s26, 4294967168 }
  0x5a   : > { %3405 = dma.done.wait (%p59_p1), [#allocation6], 4096  }
  0x5b   : > { %3407 = vsyncadd (%p59_p1), [#allocation6], 4294963200 }
  0x5c   : > { %3409 = dma.done.wait (%p59_p1), [#allocation9], 3072  }
  0x5d   : > { %3411 = vsyncadd (%p59_p1), [#allocation9], 4294964224 }
  0x5e   : > { %3413 = dma.done.wait (%p59_p1), [#allocation12], 3072  }
  0x5f   : > { %3415 = vsyncadd (%p59_p1), [#allocation12], 4294964224 }
  0x60   : > { %3417 = dma.done.wait (%p59_p1), [#allocation15], 2064  }
  0x61   : > { %3419 = vsyncadd (%p59_p1), [#allocation15], 4294965232  ;;  %v3717_v0 = vld [vmem:[%s638_s10] sm:$0xff]  ;;  %v3454_v1 = vmov 128.0   ;;  %v2485_v2 = vld [vmem:[#allocation5 + $0xa8] sm:$0xf] }
  0x62   : > { %746 = vadd.xlane.f32.xlu0 %v3717_v0  ;;  %3046 = vrcp.f32 %v3454_v1  ;;  %v2825_v3 = vld [vmem:[#allocation5 + $0xb0] sm:$0xf0]  ;;  %v2824_v4 = vld [vmem:[#allocation5 + $0xac] sm:$0xf]  ;;  %v2487_v6 = vld [vmem:[#allocation5 + $0xb4] sm:$0xf0] }
  0x63   : > { %v2486_v5 = vor.u32 %v2825_v3, %v2485_v2  ;;  %v2493_v7 = vld [vmem:[#allocation5 + $0xb0] sm:$0xf]  ;;  %v2826_v8 = vld [vmem:[#allocation5 + $0xb8] sm:$0xf0]  ;;  %v2490_v9 = vor.u32 %v2824_v4, %v2487_v6  ;;  %v2821_v23 = vld [vmem:[#allocation5 + $0x94] sm:$0xf] }
  0x64   : > { %v2494_v10 = vor.u32 %v2826_v8, %v2493_v7  ;;  %v2473_v21 = vld [vmem:[#allocation5 + $0x90] sm:$0xf]  ;;  %v2822_v22 = vld [vmem:[#allocation5 + $0x98] sm:$0xf0]  ;;  %v2475_v25 = vld [vmem:[#allocation5 + $0x9c] sm:$0xf0] }
  0x65   : > { %946 = vmatpush.bf16.msra.mxu0 %v2486_v5  ;;  %959 = vmatpush.bf16.msra.mxu1 %v2490_v9  ;;  %v2474_v24 = vor.u32 %v2822_v22, %v2473_v21  ;;  %v2481_v26 = vld [vmem:[#allocation5 + $0x98] sm:$0xf]  ;;  %v2823_v27 = vld [vmem:[#allocation5 + $0xa0] sm:$0xf0]  ;;  %v2478_v28 = vor.u32 %v2821_v23, %v2475_v25  ;;  %v2818_v32 = vld [vmem:[#allocation5 + $0x7c] sm:$0xf] }
  0x66   : > { %972 = vmatpush.bf16.msra.mxu2 %v2494_v10  ;;  %v2482_v29 = vor.u32 %v2823_v27, %v2481_v26  ;;  %v2461_v30 = vld [vmem:[#allocation5 + $0x78] sm:$0xf]  ;;  %v2819_v31 = vld [vmem:[#allocation5 + $0x80] sm:$0xf0]  ;;  %v2463_v34 = vld [vmem:[#allocation5 + $0x84] sm:$0xf0] }
  0x67   : > { %v2462_v33 = vor.u32 %v2819_v31, %v2461_v30  ;;  %v2469_v35 = vld [vmem:[#allocation5 + $0x80] sm:$0xf]  ;;  %v2820_v36 = vld [vmem:[#allocation5 + $0x88] sm:$0xf0]  ;;  %v2466_v37 = vor.u32 %v2818_v32, %v2463_v34  ;;  %v2815_v41 = vld [vmem:[#allocation5 + $0x64] sm:$0xf] }
  0x68   : > { %v3047_v11 = vpop.eup %3046  ;;  %v2470_v38 = vor.u32 %v2820_v36, %v2469_v35  ;;  %v2449_v39 = vld [vmem:[#allocation5 + $0x60] sm:$0xf]  ;;  %v2816_v40 = vld [vmem:[#allocation5 + $0x68] sm:$0xf0]  ;;  %v2451_v43 = vld [vmem:[#allocation5 + $0x6c] sm:$0xf0] }
  0x69   : > { %v749_v12 = vmul.f32 128.0, %v3047_v11  ;;  %vm753_vm0 = vweird.f32 %v3047_v11  ;;  %947 = vmatpush.bf16.msra.mxu0 %v2474_v24  ;;  %960 = vmatpush.bf16.msra.mxu1 %v2478_v28  ;;  %v2450_v42 = vor.u32 %v2816_v40, %v2449_v39  ;;  %v2457_v44 = vld [vmem:[#allocation5 + $0x68] sm:$0xf]  ;;  %v2817_v45 = vld [vmem:[#allocation5 + $0x70] sm:$0xf0]  ;;  %v2454_v46 = vor.u32 %v2815_v41, %v2451_v43  ;;  %s3970_s21 = sld [smem:[#allocation26_spill]] }
  0x6a   : > { %973 = vmatpush.bf16.msra.mxu2 %v2482_v29  ;;  %v2458_v47 = vor.u32 %v2817_v45, %v2457_v44  ;;  %v2437_v48 = vld [vmem:[#allocation5 + $0x48] sm:$0xf]  ;;  %v2813_v49 = vld [vmem:[#allocation5 + $0x50] sm:$0xf0]  ;;  %v2812_v50 = vld [vmem:[#allocation5 + $0x4c] sm:$0xf] }
  0x6b   : > { %v750_v13 = vsub.f32 1.0, %v749_v12  ;;  %v2438_v51 = vor.u32 %v2813_v49, %v2437_v48  ;;  %v2439_v52 = vld [vmem:[#allocation5 + $0x54] sm:$0xf0]  ;;  %v2445_v53 = vld [vmem:[#allocation5 + $0x50] sm:$0xf]  ;;  %vm988_vm4 = vcmask 261120  }
  0x6c   : > { %v2814_v54 = vld [vmem:[#allocation5 + $0x58] sm:$0xf0]  ;;  %v2442_v55 = vor.u32 %v2812_v50, %v2439_v52  ;;  %v2425_v57 = vld [vmem:[#allocation5 + $0x30] sm:$0xf]  ;;  %v2809_v59 = vld [vmem:[#allocation5 + $0x34] sm:$0xf] }
  0x6d   : > { %v751_v14 = vmul.f32 %v3047_v11, %v750_v13  ;;  %948 = vmatpush.bf16.msra.mxu0 %v2462_v33  ;;  %961 = vmatpush.bf16.msra.mxu1 %v2466_v37  ;;  %v2446_v56 = vor.u32 %v2814_v54, %v2445_v53  ;;  %v2810_v58 = vld [vmem:[#allocation5 + $0x38] sm:$0xf0]  ;;  %v2427_v61 = vld [vmem:[#allocation5 + $0x3c] sm:$0xf0]  ;;  %v2433_v62 = vld [vmem:[#allocation5 + $0x38] sm:$0xf] }
  0x6e   : > { %974 = vmatpush.bf16.msra.mxu2 %v2470_v38  ;;  %v2426_v60 = vor.u32 %v2810_v58, %v2425_v57  ;;  %v2811_v63 = vld [vmem:[#allocation5 + $0x40] sm:$0xf0]  ;;  %v2430_v1 = vor.u32 %v2809_v59, %v2427_v61  ;;  %v2413_v3 = vld [vmem:[#allocation5 + $0x18] sm:$0xf]  ;;  %v2806_v5 = vld [vmem:[#allocation5 + $0x1c] sm:$0xf] }
  0x6f   : > { %v752_v15 = vadd.f32 %v3047_v11, %v751_v14  ;;  %v2434_v2 = vor.u32 %v2811_v63, %v2433_v62  ;;  %v2807_v4 = vld [vmem:[#allocation5 + $0x20] sm:$0xf0]  ;;  %v2415_v7 = vld [vmem:[#allocation5 + $0x24] sm:$0xf0]  ;;  %v2421_v8 = vld [vmem:[#allocation5 + $0x20] sm:$0xf] }
  0x70   : > { %v2414_v6 = vor.u32 %v2807_v4, %v2413_v3  ;;  %v2808_v9 = vld [vmem:[#allocation5 + $0x28] sm:$0xf0]  ;;  %v2418_v10 = vor.u32 %v2806_v5, %v2415_v7  ;;  %v2401_v12 = vld [vmem:[#allocation5] sm:$0xf]  ;;  %v2803_v14 = vld [vmem:[#allocation5 + $0x4] sm:$0xf] }
  0x71   : > { %v3720_v16 = vsel %vm753_vm0, %v3047_v11, %v752_v15  ;;  %949 = vmatpush.bf16.msra.mxu0 %v2450_v42  ;;  %962 = vmatpush.bf16.msra.mxu1 %v2454_v46  ;;  %v2422_v11 = vor.u32 %v2808_v9, %v2421_v8  ;;  %v2804_v13 = vld [vmem:[#allocation5 + $0x8] sm:$0xf0]  ;;  %v3036_v32 = vld [vmem:[%s3970_s21] ss:$0 sm:$0xff]  ;;  %s3455_s9 = smov 64   ;;  %s3456_s24 = smov 96  }
  0x72   : > { %975 = vmatpush.bf16.msra.mxu2 %v2458_v47  ;;  %v2402_v15 = vor.u32 %v2804_v13, %v2401_v12  ;;  %v3037_v35 = vld [vmem:[%s3924_s3] ss:$0 sm:$0xff]  ;;  %vm1025_vm5 = vcmask 1043456   ;;  %s3457_s0 = smov 32   ;;  %vm1009_vm6 = vcmask 64512   ;;  %vm1229_vm7 = vcmask 523264  }
  0x73   : > { %v810_v39 = vld [vmem:[%s3926_s5] sm:$0x7]  ;;  %vm1231_vm8 = vcmask 785408   ;;  %s3971_s26 = sld [smem:[#allocation29_spill]]  ;;  %p736_p1 = scmp.lt.s32.totalorder %s3577_s20, 1 }
  0x74   : > { %v813_v40 = vperm.slane %v810_v39, 1  ;;  %v814_v45 = vperm.slane %v810_v39, 2  ;;  %s3972_s13 = sld [smem:[#allocation25_spill]]  ;;  %s2800_s23 = sshll.u32 %s3577_s20, 3 }
  0x75   : > { %950 = vmatpush.bf16.msra.mxu0 %v2438_v51  ;;  %963 = vmatpush.bf16.msra.mxu1 %v2442_v55  ;;  %s737_s10 = scalar_select %p736_p1, %s3577_s20, 1 }
  0x76   : > { %976 = vmatpush.bf16.msra.mxu2 %v2446_v56  ;;  %s3973_s12 = sld [smem:[#allocation33_spill]]  ;;  %s2201_s20 = scalar_lea.sflag [#allocation4], %s3691_s11 }
  0x77   : > { %s2398_s6 = sshll.u32 %s737_s10, 3 }
  0x79   : > { %951 = vmatpush.bf16.msra.mxu0 %v2426_v60  ;;  %964 = vmatpush.bf16.msra.mxu1 %v2430_v1 }
  0x7a   : > { %977 = vmatpush.bf16.msra.mxu2 %v2434_v2  ;;  %s739_s25 = scalar_lea.vmem %s3972_s13, %s2398_s6 }
  0x7d   : > { %952 = vmatpush.bf16.msra.mxu0 %v2414_v6  ;;  %965 = vmatpush.bf16.msra.mxu1 %v2418_v10 }
  0x7e   : > { %978 = vmatpush.bf16.msra.mxu2 %v2422_v11 }
  0x81   : > { %953 = vmatpush.bf16.msra.mxu0 %v2402_v15 }
  0xd5   : > { %v747_v17 = vpop.xlane.xlu0 %746 }
  0xd6   : > { %v755_v18 = vmul.f32 %v3720_v16, %v747_v17  ;;  %v2403_v17 = vld [vmem:[#allocation5 + $0xc] sm:$0xf0] }
  0xd7   : > { %v2406_v21 = vor.u32 %v2803_v14, %v2403_v17 }
  0xd8   : > { %v3724_v19 = vsub.f32 %v3717_v0, %v755_v18  ;;  %v2409_v18 = vld [vmem:[#allocation5 + $0x8] sm:$0xf] }
  0xd9   : > { %966 = vmatpush.bf16.msra.mxu1 %v2406_v21 }
  0xda   : > { %v757_v20 = vmul.f32 %v3724_v19, %v3724_v19 }
  0xdc   : > { %758 = vadd.xlane.f32.xlu0 %v757_v20  ;;  %v2805_v20 = vld [vmem:[#allocation5 + $0x10] sm:$0xf0] }
  0xdd   : > { %v2410_v22 = vor.u32 %v2805_v20, %v2409_v18 }
  0xdf   : > { %979 = vmatpush.bf16.msra.mxu2 %v2410_v22 }
 0x14f   : > { %v759_v23 = vpop.xlane.xlu0 %758 }
 0x150   : > { %v760_v24 = vmul.f32 %v759_v23, %v3720_v16 }
 0x152   : > { %v761_v25 = vadd.f32 1e-06, %v760_v24 }
 0x154   : > { %3048 = vrsqrt.f32 %v761_v25  ;;  %vm768_vm2 = vweird.f32 %v761_v25 }
 0x15a   : > { %v3049_v26 = vpop.eup %3048 }
 0x15b   : > { %v763_v27 = vmul.f32 %v3049_v26, %v761_v25  ;;  %vm769_vm1 = vweird.f32 %v3049_v26 }
 0x15c   : > { %vm770_vm3 = vmor %vm768_vm2, %vm769_vm1 }
 0x15d   : > { %v764_v28 = vmul.f32 %v3049_v26, %v763_v27 }
 0x15f   : > { %v765_v29 = vmul.f32 0.5, %v764_v28 }
 0x161   : > { %v766_v30 = vsub.f32 1.5, %v765_v29 }
 0x163   : > { %v767_v31 = vmul.f32 %v3049_v26, %v766_v30 }
 0x165   : > { %v771_v33 = vsel %vm770_vm3, %v3049_v26, %v767_v31 }
 0x166   : > { %v772_v34 = vmul.f32 %v771_v33, %v3724_v19  ;;  %v812_v19 = vperm.slane %v810_v39, 0 }
 0x168   : > { %v774_v36 = vmul.f32 %v3036_v32, %v772_v34 }
 0x16a   : > { %v776_v37 = vadd.f32 %v3037_v35, %v774_v36 }
 0x16c   : > { %v777_v38 = vpack.c.bf16 %v776_v37, %v776_v37 }
 0x16e   : > { %954 = vmatmul.bf16.vlgmr.msra.gmra.mxu0 %v777_v38  ;;  %967 = vmatmul.bf16.vlgmr.msra.gmra.mxu1 %v777_v38 }
 0x16f   : > { %980 = vmatmul.bf16.vlgmr.msra.gmra.mxu2 %v777_v38 }
 0x1eb   : > { %v955_v41 = vpop.f32.mrf.mxu0  ;;  %v968_v42 = vpop.f32.mrf.mxu1 }
 0x1ec   : > { %v969_v43 = vadd.f32 %v968_v42, %v813_v40  ;;  %v956_v47 = vadd.f32 %v955_v41, %v812_v19 }
 0x1ee   : > { %v986_v44 = vpack.c.bf16 %v969_v43, %v969_v43  ;;  %v985_v53 = vpack.c.bf16 %v956_v47, %v956_v47 }
 0x1f0   : > { %1104 = vrot.lane.b32.xlu0 %v986_v44, %s3455_s9  ;;  %1046 = vrot.lane.b32.xlu2 %v986_v44, %s3456_s24  ;;  %v993_v46 = vsel %vm988_vm4, %v986_v44, 0 }
 0x1f1   : > { %1002 = vmatpush.bf16.xpose.msra.mxu3 %v993_v46 }
 0x1f2   : > { %v981_v48 = vpop.f32.mrf.mxu2 }
 0x1f3   : > { %v982_v49 = vadd.f32 %v981_v48, %v814_v45  ;;  %v957_v50 = vpop.f32.mrf.mxu0  ;;  %v970_v51 = vpop.f32.mrf.mxu1 }
 0x1f5   : > { %v3742_v52 = vpack.c.bf16 %v982_v49, %v982_v49 }
 0x1f7   : > { %v1027_v54 = vsel %vm1025_vm5, %v3742_v52, 0 }
 0x1f8   : > { %1043 = vrot.lane.b32.xlu2 %v985_v53, %s3456_s24  ;;  %2495 = vmatmul.msk.bf16.vlgmr.msra.gmra.mxu3 %vm988_vm4, %v985_v53 }
 0x1f9   : > { %1036 = vmatpush.bf16.msrb.mxu3 %v1027_v54 }
 0x1fa   : > { %v983_v55 = vpop.f32.mrf.mxu2 }
 0x200   : > { %1102 = vrot.lane.b32.xlu2 %v985_v53, %s3455_s9 }
 0x208   : > { %1159 = vrot.lane.b32.xlu2 %v985_v53, %s3457_s0 }
 0x24a   : > { %v1047_v56 = vpop.permute.xlu2 %1046 }
 0x24b   : > { %v1052_v57 = vsel %vm988_vm4, %v1047_v56, 0 }
 0x24c   : > { %1061 = vmatpush.bf16.xpose.msra.mxu3 %v1052_v57 }
 0x252   : > { %v1044_v58 = vpop.permute.xlu2 %1043 }
 0x25a   : > { %v1103_v61 = vpop.permute.xlu2 %1102 }
 0x262   : > { %v1105_v59 = vpop.permute.xlu0 %1104  ;;  %v1160_v23 = vpop.permute.xlu2 %1159 }
 0x263   : > { %v1110_v60 = vsel %vm988_vm4, %v1105_v59, 0 }
 0x264   : > { %1119 = vmatpush.bf16.xpose.msrb.mxu2 %v1110_v60 }
 0x26b   : > { %2499 = vmatmul.msk.bf16.vlgmr.msrb.gmra.mxu2 %vm988_vm4, %v1103_v61 }
 0x27b   : > { %v1004_v62 = vpop.f32.mrf.mxu3 }
 0x27c   : > { %v1008_v63 = vmul.f32 0.17677669, %v1004_v62 }
 0x27e   : > { %v1010_v1 = vsel %vm1009_vm6, %v1008_v63, -inf }
 0x27f   : > { %1011 = vmax.xlane.f32.xlu1 %v1010_v1 }
 0x283   : > { %v1006_v2 = vpop.f32.mrf.mxu3 }
 0x2ee   : > { %v1121_v3 = vpop.f32.mrf.mxu2 }
 0x2ef   : > { %v1125_v4 = vmul.f32 0.17677669, %v1121_v3  ;;  %v2834_v3 = vld [vmem:[#allocation7 + $0x38] sm:$0xff] }
 0x2f0   : > { %1298 = vmatpush.bf16.msrb.mxu1 %v2834_v3 }
 0x2f1   : > { %v1126_v5 = vsel %vm1009_vm6, %v1125_v4, -inf }
 0x2f2   : > { %1127 = vmax.xlane.f32.xlu0 %v1126_v5  ;;  %v1012_v6 = vpop.xlane.xlu1 %1011 }
 0x2f3   : > { %v1013_v7 = vsub.f32 %v1008_v63, %v1012_v6  ;;  %v2832_v6 = vld [vmem:[#allocation7 + $0x28] sm:$0xff] }
 0x2f5   : > { %v1014_v8 = vmul.f32 1.442695, %v1013_v7  ;;  %v2831_v7 = vld [vmem:[#allocation7 + $0x20] sm:$0xff] }
 0x2f6   : > { %v1123_v9 = vpop.f32.mrf.mxu2 }
 0x2f7   : > { %3050 = vpow2.f32 %v1014_v8  ;;  %v2830_v8 = vld [vmem:[#allocation7 + $0x18] sm:$0xff] }
 0x2fd   : > { %v3051_v10 = vpop.eup %3050 }
 0x2fe   : > { %v1016_v11 = vsel %vm1009_vm6, %v3051_v10, 0.0 }
 0x2ff   : > { %1017 = vadd.xlane.f32.xlu1 %v1016_v11  ;;  %v2829_v11 = vld [vmem:[#allocation7 + $0x10] sm:$0xff] }
 0x306   : > { %1081 = vrot.lane.b32.xlu0 %v3742_v52, %s3456_s24 }
 0x318   : > { %1161 = vrot.lane.b32.xlu1 %v986_v44, %s3457_s0 }
 0x365   : > { %v1128_v12 = vpop.xlane.xlu0 %1127 }
 0x366   : > { %v1129_v26 = vsub.f32 %v1125_v4, %v1128_v12  ;;  %v2833_v4 = vld [vmem:[#allocation7 + $0x30] sm:$0xff]  ;;  %v2828_v12 = vld [vmem:[#allocation7 + $0x8] sm:$0xff] }
 0x367   : > { %1299 = vmatpush.bf16.msrb.mxu1 %v2833_v4 }
 0x368   : > { %v1130_v27 = vmul.f32 1.442695, %v1129_v26 }
 0x36b   : > { %1300 = vmatpush.bf16.msrb.mxu1 %v2832_v6 }
 0x36f   : > { %1301 = vmatpush.bf16.msrb.mxu1 %v2831_v7 }
 0x372   : > { %v1018_v13 = vpop.xlane.xlu1 %1017 }
 0x373   : > { %3052 = vrcp.f32 %v1018_v13  ;;  %1302 = vmatpush.bf16.msrb.mxu1 %v2830_v8  ;;  %v2827_v13 = vld [vmem:[#allocation7] sm:$0xff] }
 0x374   : > { %3054 = vpow2.f32 %v1130_v27 }
 0x377   : > { %1303 = vmatpush.bf16.msrb.mxu1 %v2829_v11 }
 0x378   : > { %v1082_v14 = vpop.permute.xlu0 %1081 }
 0x379   : > { %v1087_v15 = vsel %vm1025_vm5, %v1082_v14, 0  ;;  %v3053_v17 = vpop.eup %3052 }
 0x37a   : > { %1096 = vmatpush.bf16.msrb.mxu0 %v1087_v15  ;;  %v1020_v18 = vmul.f32 %v3053_v17, %v3051_v10  ;;  %v3055_v31 = vpop.eup %3054 }
 0x37b   : > { %v1132_v33 = vsel %vm1009_vm6, %v3055_v31, 0.0  ;;  %1304 = vmatpush.bf16.msrb.mxu1 %v2828_v12 }
 0x37c   : > { %v1021_v20 = vpack.c.bf16 %v1020_v18, %v1020_v18 }
 0x37e   : > { %2496 = vmatmul.msk.bf16.vlgmr.msrb.gmra.mxu3 %vm1009_vm6, %v1021_v20 }
 0x37f   : > { %1305 = vmatpush.bf16.msrb.mxu1 %v2827_v13  ;;  %v3040_v13 = vld [vmem:[%s3924_s3 + $0x1] ss:$0 sm:$0xff] }
 0x38a   : > { %v1162_v21 = vpop.permute.xlu1 %1161 }
 0x38b   : > { %v1167_v22 = vsel %vm988_vm4, %v1162_v21, 0 }
 0x38c   : > { %1176 = vmatpush.bf16.xpose.msrb.mxu3 %v1167_v22 }
 0x38e   : > { %2497 = vmatmul.msk.bf16.vlgmr.msra.gmra.mxu3 %vm988_vm4, %v1044_v58 }
 0x39e   : > { %2501 = vmatmul.msk.bf16.vlgmr.msrb.gmra.mxu3 %vm988_vm4, %v1160_v23  ;;  %v3038_v23 = vld [vmem:[%s3971_s26] ss:$0 sm:$0xff] }
 0x401   : > { %v3764_v24 = vpop.f32.mrf.mxu3 }
 0x409   : > { %v1040_v25 = vpop.f32.mrf.mxu3 }
 0x411   : > { %v1063_v28 = vpop.f32.mrf.mxu3 }
 0x412   : > { %v1067_v29 = vmul.f32 0.17677669, %v1063_v28  ;;  %v2625_v28 = vld [vmem:[#allocation10 + $0x70] sm:$0xf] }
 0x414   : > { %v1068_v30 = vsel %vm1009_vm6, %v1067_v29, -inf }
 0x415   : > { %1069 = vmax.xlane.f32.xlu2 %v1068_v30  ;;  %v2617_v30 = vld [vmem:[#allocation10 + $0x60] sm:$0xf] }
 0x419   : > { %v1065_v32 = vpop.f32.mrf.mxu3 }
 0x41a   : > { %v2856_v32 = vld [vmem:[#allocation10 + $0x64] sm:$0xf0] }
 0x41d   : > { %1133 = vadd.xlane.f32.xlu2 %v1132_v33  ;;  %v2618_v33 = vor.u32 %v2856_v32, %v2617_v30 }
 0x421   : > { %v1178_v34 = vpop.f32.mrf.mxu3 }
 0x422   : > { %v1182_v35 = vmul.f32 0.17677669, %v1178_v34  ;;  %v2609_v34 = vld [vmem:[#allocation10 + $0x50] sm:$0xf] }
 0x424   : > { %v1183_v36 = vsel %vm1009_vm6, %v1182_v35, -inf }
 0x425   : > { %1184 = vmax.xlane.f32.xlu1 %v1183_v36  ;;  %v2842_v36 = vld [vmem:[#allocation8 + $0x38] sm:$0xff] }
 0x429   : > { %v1180_v37 = vpop.f32.mrf.mxu3 }
 0x488   : > { %v1070_v38 = vpop.xlane.xlu2 %1069 }
 0x489   : > { %v1071_v39 = vsub.f32 %v1067_v29, %v1070_v38  ;;  %v2858_v29 = vld [vmem:[#allocation10 + $0x74] sm:$0xf0]  ;;  %v2601_v38 = vld [vmem:[#allocation10 + $0x40] sm:$0xf] }
 0x48b   : > { %v1072_v40 = vmul.f32 1.442695, %v1071_v39 }
 0x48d   : > { %3056 = vpow2.f32 %v1072_v40  ;;  %v2593_v40 = vld [vmem:[#allocation10 + $0x30] sm:$0xf] }
 0x490   : > { %v1134_v47 = vpop.xlane.xlu2 %1133 }
 0x493   : > { %v3057_v41 = vpop.eup %3056 }
 0x494   : > { %v1074_v42 = vsel %vm1009_vm6, %v3057_v41, 0.0 }
 0x495   : > { %1075 = vadd.xlane.f32.xlu2 %v1074_v42 }
 0x498   : > { %v1185_v43 = vpop.xlane.xlu1 %1184 }
 0x499   : > { %v1186_v19 = vsub.f32 %v1182_v35, %v1185_v43  ;;  %v2854_v35 = vld [vmem:[#allocation10 + $0x54] sm:$0xf0]  ;;  %v2585_v43 = vld [vmem:[#allocation10 + $0x20] sm:$0xf] }
 0x49a   : > { %v2610_v37 = vor.u32 %v2854_v35, %v2609_v34 }
 0x49b   : > { %v1187_v44 = vmul.f32 1.442695, %v1186_v19  ;;  %v2848_v19 = vld [vmem:[#allocation10 + $0x24] sm:$0xf0] }
 0x49d   : > { %3058 = vpow2.f32 %v1187_v44  ;;  %v2586_v44 = vor.u32 %v2848_v19, %v2585_v43 }
 0x49e   : > { %3060 = vrcp.f32 %v1134_v47 }
 0x4a3   : > { %v3059_v45 = vpop.eup %3058 }
 0x4a4   : > { %v1189_v46 = vsel %vm1009_vm6, %v3059_v45, 0.0  ;;  %v3061_v49 = vpop.eup %3060 }
 0x4a5   : > { %1190 = vadd.xlane.f32.xlu1 %v1189_v46  ;;  %v1136_v51 = vmul.f32 %v3061_v49, %v3055_v31  ;;  %v2626_v31 = vor.u32 %v2858_v29, %v2625_v28  ;;  %v2846_v46 = vld [vmem:[#allocation10 + $0x14] sm:$0xf0] }
 0x4a7   : > { %v1137_v57 = vpack.c.bf16 %v1136_v51, %v1136_v51  ;;  %1527 = vmatpush.bf16.msra.mxu3 %v2626_v31 }
 0x4ab   : > { %1528 = vmatpush.bf16.msra.mxu3 %v2618_v33 }
 0x4ad   : > { %1138 = vrot.lane.b32.xlu2 %v3742_v52, %s3455_s9 }
 0x4af   : > { %1529 = vmatpush.bf16.msra.mxu3 %v2610_v37 }
 0x4be   : > { %1195 = vrot.lane.b32.xlu1 %v3742_v52, %s3457_s0 }
 0x508   : > { %v1076_v48 = vpop.xlane.xlu2 %1075 }
 0x509   : > { %3062 = vrcp.f32 %v1076_v48 }
 0x50f   : > { %v3063_v50 = vpop.eup %3062 }
 0x510   : > { %v1078_v53 = vmul.f32 %v3063_v50, %v3057_v41  ;;  %v1139_v54 = vpop.permute.xlu2 %1138  ;;  %v2850_v41 = vld [vmem:[#allocation10 + $0x34] sm:$0xf0] }
 0x511   : > { %v1144_v55 = vsel %vm1025_vm5, %v1139_v54, 0  ;;  %v2594_v42 = vor.u32 %v2850_v41, %v2593_v40  ;;  %v2844_v54 = vld [vmem:[#allocation10 + $0x4] sm:$0xf0]  ;;  %v2855_v40 = vld [vmem:[#allocation10 + $0x64] sm:$0xf] }
 0x512   : > { %1153 = vmatpush.bf16.msra.mxu2 %v1144_v55  ;;  %v1079_v56 = vpack.c.bf16 %v1078_v53, %v1078_v53  ;;  %v2569_v53 = vld [vmem:[#allocation10] sm:$0xf]  ;;  %v2841_v55 = vld [vmem:[#allocation8 + $0x30] sm:$0xff] }
 0x514   : > { %2498 = vmatmul.msk.bf16.vlgmr.msrb.gmra.mxu0 %vm1009_vm6, %v1079_v56  ;;  %v2570_v56 = vor.u32 %v2844_v54, %v2569_v53  ;;  %v2595_v53 = vld [vmem:[#allocation10 + $0x38] sm:$0xf0] }
 0x515   : > { %2500 = vmatmul.msk.bf16.vlgmr.msra.gmra.mxu2 %vm1009_vm6, %v1137_v57  ;;  %v742_v57 = vld [vmem:[%s739_s25] sm:$0xff]  ;;  %s3974_s25 = sld [smem:[#allocation31_spill]] }
 0x516   : > { %1412 = vmatpush.bf16.msrb.mxu2 %v2842_v36 }
 0x518   : > { %v1191_v58 = vpop.xlane.xlu1 %1190 }
 0x519   : > { %3064 = vrcp.f32 %v1191_v58  ;;  %v3801_v58 = vpack.c.bf16 %v742_v57, %v742_v57 }
 0x51a   : > { %1413 = vmatpush.bf16.msrb.mxu2 %v2841_v55  ;;  %v2847_v55 = vld [vmem:[#allocation10 + $0x24] sm:$0xf] }
 0x51f   : > { %v3065_v52 = vpop.eup %3064 }
 0x520   : > { %v1193_v59 = vmul.f32 %v3065_v52, %v3059_v45  ;;  %v2577_v45 = vld [vmem:[#allocation10 + $0x10] sm:$0xf]  ;;  %v2840_v52 = vld [vmem:[#allocation8 + $0x28] sm:$0xff] }
 0x521   : > { %v2578_v47 = vor.u32 %v2846_v46, %v2577_v45  ;;  %1414 = vmatpush.bf16.msrb.mxu2 %v2840_v52  ;;  %v2611_v45 = vld [vmem:[#allocation10 + $0x58] sm:$0xf0]  ;;  %v2845_v52 = vld [vmem:[#allocation10 + $0x14] sm:$0xf] }
 0x522   : > { %v1194_v62 = vpack.c.bf16 %v1193_v59, %v1193_v59  ;;  %v2839_v59 = vld [vmem:[#allocation8 + $0x20] sm:$0xff] }
 0x525   : > { %1415 = vmatpush.bf16.msrb.mxu2 %v2839_v59  ;;  %v2579_v59 = vld [vmem:[#allocation10 + $0x18] sm:$0xf0] }
 0x530   : > { %v1196_v60 = vpop.permute.xlu1 %1195 }
 0x531   : > { %v1201_v61 = vsel %vm1025_vm5, %v1196_v60, 0  ;;  %v2838_v60 = vld [vmem:[#allocation8 + $0x18] sm:$0xff] }
 0x532   : > { %1210 = vmatpush.bf16.msra.mxu0 %v1201_v61  ;;  %1416 = vmatpush.bf16.msrb.mxu2 %v2838_v60  ;;  %v2837_v61 = vld [vmem:[#allocation8 + $0x10] sm:$0xff]  ;;  %v2582_v60 = vor.u32 %v2845_v52, %v2579_v59 }
 0x535   : > { %2502 = vmatmul.msk.bf16.vlgmr.msra.gmra.mxu0 %vm1009_vm6, %v1194_v62  ;;  %v2836_v62 = vld [vmem:[#allocation8 + $0x8] sm:$0xff] }
 0x536   : > { %1417 = vmatpush.bf16.msrb.mxu2 %v2837_v61 }
 0x53a   : > { %1418 = vmatpush.bf16.msrb.mxu2 %v2836_v62  ;;  %v2843_v62 = vld [vmem:[#allocation10 + $0x4] sm:$0xf] }
 0x591   : > { %v1098_v63 = vpop.f32.mrf.mxu0 }
 0x592   : > { %1217 = vrot.lane.b32.xlu0 %v1098_v63, %s3457_s0  ;;  %v2835_v63 = vld [vmem:[#allocation8] sm:$0xff] }
 0x593   : > { %1419 = vmatpush.bf16.msrb.mxu2 %v2835_v63  ;;  %v2571_v63 = vld [vmem:[#allocation10 + $0x8] sm:$0xf0] }
 0x598   : > { %v1155_v1 = vpop.f32.mrf.mxu2 }
 0x599   : > { %v1100_v2 = vpop.f32.mrf.mxu0 }
 0x59a   : > { %1221 = vrot.lane.b32.xlu0 %v1155_v1, %s3455_s9 }
 0x5a0   : > { %v1157_v5 = vpop.f32.mrf.mxu2 }
 0x5b2   : > { %v1212_v9 = vpop.f32.mrf.mxu0 }
 0x5b3   : > { %1225 = vrot.lane.b32.xlu2 %v1212_v9, %s3456_s24 }
 0x5ba   : > { %v1214_v10 = vpop.f32.mrf.mxu0 }
 0x5bb   : > { %v3039_v10 = vld [vmem:[%s3970_s21 + $0x1] ss:$0 sm:$0xff] }
 0x604   : > { %v1218_v14 = vpop.permute.xlu0 %1217 }
 0x605   : > { %v1228_v15 = vsel %vm988_vm4, %v3764_v24, %v1218_v14 }
 0x60c   : > { %v1222_v17 = vpop.permute.xlu0 %1221 }
 0x60d   : > { %v1230_v18 = vsel %vm1229_vm7, %v1228_v15, %v1222_v17  ;;  %v1226_v20 = vpop.permute.xlu2 %1225 }
 0x60e   : > { %v1232_v21 = vsel %vm1231_vm8, %v1230_v18, %v1226_v20  ;;  %v3814_v18 = vld [vmem:[%s3973_s12] sm:$0x3]  ;;  %s3976_s12 = sld [smem:[#allocation36_spill]] }
 0x60f   : > { %v1233_v22 = vpack.c.bf16 %v1232_v21, %v1232_v21  ;;  %v1443_v20 = vperm.slane %v3814_v18, 0 }
 0x611   : > { %1306 = vmatmul.bf16.vlgmr.msrb.gmra.mxu1 %v1233_v22 }
 0x68e   : > { %v1307_v25 = vpop.f32.mrf.mxu1 }
 0x68f   : > { %v1311_v26 = vadd.f32 %v1307_v25, %v3717_v0  ;;  %v2852_v0 = vld [vmem:[#allocation10 + $0x44] sm:$0xf0] }
 0x690   : > { %v2602_v39 = vor.u32 %v2852_v0, %v2601_v38  ;;  %v2857_v0 = vld [vmem:[#allocation10 + $0x74] sm:$0xf] }
 0x691   : > { %v3791_v27 = vadd.f32 %v3038_v23, %v1311_v26 }
 0x692   : > { %1530 = vmatpush.bf16.msra.mxu3 %v2602_v39  ;;  %v2627_v39 = vld [vmem:[#allocation10 + $0x78] sm:$0xf0] }
 0x693   : > { %1319 = vadd.xlane.f32.xlu0 %v3791_v27  ;;  %v2630_v41 = vor.u32 %v2857_v0, %v2627_v39 }
 0x695   : > { %1540 = vmatpush.bf16.msrb.mxu0 %v2630_v41 }
 0x696   : > { %v1309_v24 = vpop.f32.mrf.mxu1  ;;  %1531 = vmatpush.bf16.msra.mxu3 %v2594_v42  ;;  %v2619_v42 = vld [vmem:[#allocation10 + $0x68] sm:$0xf0] }
 0x697   : > { %v3041_v24 = vld [vmem:[%s3974_s25] ss:$0 sm:$0xff]  ;;  %v2622_v43 = vor.u32 %v2855_v40, %v2619_v42 }
 0x699   : > { %1541 = vmatpush.bf16.msrb.mxu0 %v2622_v43 }
 0x69a   : > { %1532 = vmatpush.bf16.msra.mxu3 %v2586_v44  ;;  %v2853_v44 = vld [vmem:[#allocation10 + $0x54] sm:$0xf] }
 0x69b   : > { %v2614_v46 = vor.u32 %v2853_v44, %v2611_v45 }
 0x69d   : > { %1542 = vmatpush.bf16.msrb.mxu0 %v2614_v46 }
 0x69e   : > { %1533 = vmatpush.bf16.msra.mxu3 %v2578_v47  ;;  %v2851_v47 = vld [vmem:[#allocation10 + $0x44] sm:$0xf] }
 0x6a2   : > { %1534 = vmatpush.bf16.msra.mxu3 %v2570_v56  ;;  %v2587_v56 = vld [vmem:[#allocation10 + $0x28] sm:$0xf0] }
 0x6a3   : > { %v2590_v57 = vor.u32 %v2847_v55, %v2587_v56 }
 0x6a5   : > { %1535 = vmatmul.bf16.vlgmr.msra.gmra.mxu3 %v3801_v58 }
 0x706   : > { %v1320_v48 = vpop.xlane.xlu0 %1319 }
 0x707   : > { %v1321_v49 = vmul.f32 %v1320_v48, %v3720_v16  ;;  %v2603_v48 = vld [vmem:[#allocation10 + $0x48] sm:$0xf0] }
 0x709   : > { %v1322_v50 = vsub.f32 %v3791_v27, %v1321_v49  ;;  %v2606_v49 = vor.u32 %v2851_v47, %v2603_v48 }
 0x70b   : > { %v1323_v51 = vmul.f32 %v1322_v50, %v1322_v50  ;;  %1543 = vmatpush.bf16.msrb.mxu0 %v2606_v49 }
 0x70d   : > { %1324 = vadd.xlane.f32.xlu1 %v1323_v51  ;;  %v2849_v51 = vld [vmem:[#allocation10 + $0x34] sm:$0xf] }
 0x70e   : > { %v2598_v54 = vor.u32 %v2849_v51, %v2595_v53 }
 0x710   : > { %1544 = vmatpush.bf16.msrb.mxu0 %v2598_v54 }
 0x714   : > { %1545 = vmatpush.bf16.msrb.mxu0 %v2590_v57 }
 0x718   : > { %1546 = vmatpush.bf16.msrb.mxu0 %v2582_v60 }
 0x728   : > { %v1536_v21 = vpop.f32.mrf.mxu3 }
 0x729   : > { %v1537_v22 = vadd.f32 %v1536_v21, %v1443_v20 }
 0x72b   : > { %v1554_v23 = vpack.c.bf16 %v1537_v22, %v1537_v22 }
 0x72d   : > { %1611 = vrot.lane.b32.xlu2 %v1554_v23, %s3456_s24  ;;  %v1560_v25 = vsel %vm988_vm4, %v1554_v23, 0 }
 0x72e   : > { %1569 = vmatpush.bf16.xpose.msra.mxu1 %v1560_v25  ;;  %v1444_v25 = vperm.slane %v3814_v18, 1 }
 0x730   : > { %v1538_v26 = vpop.f32.mrf.mxu3 }
 0x735   : > { %1669 = vrot.lane.b32.xlu2 %v1554_v23, %s3455_s9 }
 0x780   : > { %v1325_v1 = vpop.xlane.xlu1 %1324 }
 0x781   : > { %v1326_v2 = vmul.f32 %v1325_v1, %v3720_v16 }
 0x783   : > { %v1327_v3 = vadd.f32 1e-06, %v1326_v2 }
 0x785   : > { %3066 = vrsqrt.f32 %v1327_v3  ;;  %vm1334_vm10 = vweird.f32 %v1327_v3 }
 0x787   : > { %v1612_v32 = vpop.permute.xlu2 %1611 }
 0x788   : > { %v1617_v33 = vsel %vm988_vm4, %v1612_v32, 0 }
 0x789   : > { %1626 = vmatpush.bf16.xpose.msrb.mxu3 %v1617_v33 }
 0x78b   : > { %v3067_v4 = vpop.eup %3066 }
 0x78c   : > { %v1329_v5 = vmul.f32 %v3067_v4, %v1327_v3  ;;  %vm1335_vm9 = vweird.f32 %v3067_v4  ;;  %v2574_v3 = vor.u32 %v2843_v62, %v2571_v63 }
 0x78d   : > { %vm1336_vm11 = vmor %vm1334_vm10, %vm1335_vm9 }
 0x78e   : > { %v1330_v6 = vmul.f32 %v3067_v4, %v1329_v5  ;;  %1547 = vmatpush.bf16.msrb.mxu0 %v2574_v3 }
 0x78f   : > { %v1670_v34 = vpop.permute.xlu2 %1669 }
 0x790   : > { %v1331_v7 = vmul.f32 0.5, %v1330_v6  ;;  %v1675_v35 = vsel %vm988_vm4, %v1670_v34, 0 }
 0x791   : > { %1684 = vmatpush.bf16.xpose.msrb.mxu1 %v1675_v35  ;;  %1548 = vmatmul.bf16.vlgmr.msrb.gmra.mxu0 %v3801_v58 }
 0x792   : > { %v1332_v8 = vsub.f32 1.5, %v1331_v7 }
 0x794   : > { %v1333_v9 = vmul.f32 %v3067_v4, %v1332_v8 }
 0x796   : > { %v1337_v11 = vsel %vm1336_vm11, %v3067_v4, %v1333_v9 }
 0x797   : > { %v1338_v12 = vmul.f32 %v1337_v11, %v1322_v50 }
 0x799   : > { %v1340_v14 = vmul.f32 %v3039_v10, %v1338_v12 }
 0x79b   : > { %v1342_v15 = vadd.f32 %v3040_v13, %v1340_v14 }
 0x79d   : > { %v1343_v17 = vpack.c.bf16 %v1342_v15, %v1342_v15 }
 0x79f   : > { %1420 = vmatmul.bf16.vlgmr.msrb.gmra.mxu2 %v1343_v17 }
 0x80e   : > { %v1549_v26 = vpop.f32.mrf.mxu0 }
 0x822   : > { %v1421_v28 = vpop.f32.mrf.mxu2 }
 0x823   : > { %v1422_v29 = vadd.f32 %v3041_v24, %v1421_v28  ;;  %v1550_v24 = vadd.f32 %v1549_v26, %v1444_v25 }
 0x825   : > { %v1553_v30 = vpack.c.bf16 %v1422_v29, %v1422_v29  ;;  %v1555_v28 = vpack.c.bf16 %v1550_v24, %v1550_v24 }
 0x827   : > { %1724 = vrot.lane.b32.xlu0 %v1553_v30, %s3457_s0  ;;  %1608 = vrot.lane.b32.xlu2 %v1553_v30, %s3456_s24  ;;  %v1592_v29 = vsel %vm1025_vm5, %v1555_v28, 0 }
 0x828   : > { %2631 = vmatmul.msk.bf16.vlgmr.msra.gmra.mxu1 %vm988_vm4, %v1553_v30  ;;  %1601 = vmatpush.bf16.msra.mxu2 %v1592_v29 }
 0x82a   : > { %v1423_v31 = vpop.f32.mrf.mxu2 }
 0x82f   : > { %1726 = vrot.lane.b32.xlu2 %v1554_v23, %s3457_s0 }
 0x837   : > { %1667 = vrot.lane.b32.xlu2 %v1553_v30, %s3455_s9  ;;  %v1551_v30 = vpop.f32.mrf.mxu0 }
 0x881   : > { %v1609_v36 = vpop.permute.xlu2 %1608 }
 0x882   : > { %2633 = vmatmul.msk.bf16.vlgmr.msrb.gmra.mxu3 %vm988_vm4, %v1609_v36 }
 0x889   : > { %v1727_v37 = vpop.permute.xlu2 %1726 }
 0x88a   : > { %v1732_v38 = vsel %vm988_vm4, %v1727_v37, 0 }
 0x88b   : > { %1741 = vmatpush.bf16.xpose.msra.mxu3 %v1732_v38 }
 0x891   : > { %v1668_v19 = vpop.permute.xlu2 %1667 }
 0x892   : > { %2635 = vmatmul.msk.bf16.vlgmr.msrb.gmra.mxu1 %vm988_vm4, %v1668_v19 }
 0x899   : > { %v1725_v50 = vpop.permute.xlu0 %1724 }
 0x89a   : > { %2637 = vmatmul.msk.bf16.vlgmr.msra.gmra.mxu3 %vm988_vm4, %v1725_v50 }
 0x8a5   : > { %v1571_v61 = vpop.f32.mrf.mxu1 }
 0x8a6   : > { %v1575_v1 = vmul.f32 0.17677669, %v1571_v61 }
 0x8a8   : > { %v1576_v2 = vsel %vm1009_vm6, %v1575_v1, -inf }
 0x8a9   : > { %1577 = vmax.xlane.f32.xlu1 %v1576_v2 }
 0x8ad   : > { %v1573_v4 = vpop.f32.mrf.mxu1 }
 0x905   : > { %v1628_v5 = vpop.f32.mrf.mxu3 }
 0x906   : > { %v1632_v6 = vmul.f32 0.17677669, %v1628_v5 }
 0x908   : > { %v1633_v7 = vsel %vm1009_vm6, %v1632_v6, -inf }
 0x909   : > { %1634 = vmax.xlane.f32.xlu2 %v1633_v7 }
 0x90d   : > { %v1630_v8 = vpop.f32.mrf.mxu3 }
 0x90f   : > { %v1686_v9 = vpop.f32.mrf.mxu1 }
 0x910   : > { %v1690_v10 = vmul.f32 0.17677669, %v1686_v9 }
 0x912   : > { %v1691_v11 = vsel %vm1009_vm6, %v1690_v10, -inf }
 0x913   : > { %1692 = vmax.xlane.f32.xlu1 %v1691_v11  ;;  %v2866_v11 = vld [vmem:[#allocation11 + $0x38] sm:$0xff] }
 0x914   : > { %1861 = vmatpush.bf16.msra.mxu1 %v2866_v11 }
 0x917   : > { %v1688_v12 = vpop.f32.mrf.mxu1 }
 0x918   : > { %v2865_v12 = vld [vmem:[#allocation11 + $0x30] sm:$0xff] }
 0x919   : > { %1862 = vmatpush.bf16.msra.mxu1 %v2865_v12  ;;  %v2683_v12 = vld [vmem:[#allocation13 + $0x18] sm:$0xf0] }
 0x91c   : > { %v1578_v13 = vpop.xlane.xlu1 %1577 }
 0x91d   : > { %v1579_v14 = vsub.f32 %v1575_v1, %v1578_v13  ;;  %v1743_v15 = vpop.f32.mrf.mxu3  ;;  %v2864_v13 = vld [vmem:[#allocation11 + $0x28] sm:$0xff] }
 0x91e   : > { %v1747_v17 = vmul.f32 0.17677669, %v1743_v15  ;;  %1863 = vmatpush.bf16.msra.mxu1 %v2864_v13  ;;  %v2862_v15 = vld [vmem:[#allocation11 + $0x18] sm:$0xff]  ;;  %v2673_v13 = vld [vmem:[#allocation13] sm:$0xf] }
 0x91f   : > { %v1580_v20 = vmul.f32 1.442695, %v1579_v14  ;;  %v2863_v14 = vld [vmem:[#allocation11 + $0x20] sm:$0xff] }
 0x920   : > { %v1748_v21 = vsel %vm1009_vm6, %v1747_v17, -inf }
 0x921   : > { %3068 = vpow2.f32 %v1580_v20  ;;  %1749 = vmax.xlane.f32.xlu1 %v1748_v21  ;;  %v2860_v20 = vld [vmem:[#allocation11 + $0x8] sm:$0xff]  ;;  %v2859_v21 = vld [vmem:[#allocation11] sm:$0xff] }
 0x922   : > { %1864 = vmatpush.bf16.msra.mxu1 %v2863_v14  ;;  %v2868_v14 = vld [vmem:[#allocation13 + $0x4] sm:$0xf0] }
 0x925   : > { %v1745_v58 = vpop.f32.mrf.mxu3 }
 0x926   : > { %1865 = vmatpush.bf16.msra.mxu1 %v2862_v15 }
 0x927   : > { %v3069_v22 = vpop.eup %3068 }
 0x928   : > { %v1582_v23 = vsel %vm1009_vm6, %v3069_v22, 0.0 }
 0x929   : > { %1583 = vadd.xlane.f32.xlu0 %v1582_v23 }
 0x93a   : > { %1646 = vrot.lane.b32.xlu1 %v1555_v28, %s3456_s24 }
 0x93d   : > { %1760 = vrot.lane.b32.xlu0 %v1555_v28, %s3457_s0 }
 0x97c   : > { %v1635_v31 = vpop.xlane.xlu2 %1634 }
 0x97d   : > { %v1636_v32 = vsub.f32 %v1632_v6, %v1635_v31 }
 0x97f   : > { %v1637_v33 = vmul.f32 1.442695, %v1636_v32 }
 0x981   : > { %3070 = vpow2.f32 %v1637_v33 }
 0x986   : > { %v1693_v34 = vpop.xlane.xlu1 %1692 }
 0x987   : > { %v3071_v35 = vpop.eup %3070  ;;  %v1694_v36 = vsub.f32 %v1690_v10, %v1693_v34  ;;  %v2729_v34 = vld [vmem:[#allocation13 + $0x70] sm:$0xf] }
 0x988   : > { %v1639_v18 = vsel %vm1009_vm6, %v3071_v35, 0.0 }
 0x989   : > { %v1695_v37 = vmul.f32 1.442695, %v1694_v36  ;;  %1640 = vadd.xlane.f32.xlu1 %v1639_v18  ;;  %v2881_v36 = vld [vmem:[#allocation13 + $0x74] sm:$0xf] }
 0x98b   : > { %3072 = vpow2.f32 %v1695_v37  ;;  %v2731_v37 = vld [vmem:[#allocation13 + $0x78] sm:$0xf0] }
 0x991   : > { %v3073_v38 = vpop.eup %3072 }
 0x992   : > { %v1697_v0 = vsel %vm1009_vm6, %v3073_v38, 0.0 }
 0x993   : > { %1698 = vadd.xlane.f32.xlu2 %v1697_v0 }
 0x994   : > { %v1750_v39 = vpop.xlane.xlu1 %1749 }
 0x995   : > { %v1751_v40 = vsub.f32 %v1747_v17, %v1750_v39  ;;  %v2861_v17 = vld [vmem:[#allocation11 + $0x10] sm:$0xff] }
 0x996   : > { %1866 = vmatpush.bf16.msra.mxu1 %v2861_v17  ;;  %v2867_v17 = vld [vmem:[#allocation13 + $0x4] sm:$0xf] }
 0x997   : > { %v1752_v41 = vmul.f32 1.442695, %v1751_v40 }
 0x999   : > { %3074 = vpow2.f32 %v1752_v41  ;;  %v2721_v41 = vld [vmem:[#allocation13 + $0x60] sm:$0xf] }
 0x99a   : > { %1867 = vmatpush.bf16.msra.mxu1 %v2860_v20  ;;  %v2675_v20 = vld [vmem:[#allocation13 + $0x8] sm:$0xf0] }
 0x99c   : > { %v1584_v42 = vpop.xlane.xlu0 %1583 }
 0x99d   : > { %3076 = vrcp.f32 %v1584_v42  ;;  %v2880_v42 = vld [vmem:[#allocation13 + $0x64] sm:$0xf0] }
 0x99e   : > { %1868 = vmatpush.bf16.msra.mxu1 %v2859_v21  ;;  %v2674_v21 = vor.u32 %v2868_v14, %v2673_v13 }
 0x99f   : > { %v3075_v43 = vpop.eup %3074 }
 0x9a0   : > { %v1754_v19 = vsel %vm1009_vm6, %v3075_v43, 0.0 }
 0x9a1   : > { %1755 = vadd.xlane.f32.xlu2 %v1754_v19  ;;  %v2722_v19 = vor.u32 %v2880_v42, %v2721_v41  ;;  %v3043_v42 = vld [vmem:[%s3970_s21 + $0x2] ss:$0 sm:$0xff] }
 0x9a2   : > { %1703 = vrot.lane.b32.xlu1 %v1555_v28, %s3455_s9 }
 0x9a3   : > { %v3077_v44 = vpop.eup %3076 }
 0x9a4   : > { %v1586_v45 = vmul.f32 %v3077_v44, %v3069_v22  ;;  %v2723_v44 = vld [vmem:[#allocation13 + $0x68] sm:$0xf0] }
 0x9a6   : > { %v1587_v46 = vpack.c.bf16 %v1586_v45, %v1586_v45 }
 0x9a8   : > { %2632 = vmatmul.msk.bf16.vlgmr.msra.gmra.mxu2 %vm1009_vm6, %v1587_v46  ;;  %v2713_v46 = vld [vmem:[#allocation13 + $0x50] sm:$0xf] }
 0x9ac   : > { %v1647_v47 = vpop.permute.xlu1 %1646 }
 0x9ad   : > { %v1652_v48 = vsel %vm1025_vm5, %v1647_v47, 0  ;;  %v2878_v47 = vld [vmem:[#allocation13 + $0x54] sm:$0xf0] }
 0x9ae   : > { %1661 = vmatpush.bf16.msra.mxu0 %v1652_v48  ;;  %v2877_v48 = vld [vmem:[#allocation13 + $0x54] sm:$0xf] }
 0x9af   : > { %v1761_v49 = vpop.permute.xlu0 %1760 }
 0x9b0   : > { %v1766_v50 = vsel %vm1025_vm5, %v1761_v49, 0  ;;  %v2714_v49 = vor.u32 %v2878_v47, %v2713_v46 }
 0x9b2   : > { %1775 = vmatpush.bf16.msrb.mxu0 %v1766_v50  ;;  %v2715_v50 = vld [vmem:[#allocation13 + $0x58] sm:$0xf0] }
 0x9fc   : > { %v1641_v51 = vpop.xlane.xlu1 %1640 }
 0x9fd   : > { %3078 = vrcp.f32 %v1641_v51  ;;  %v2718_v51 = vor.u32 %v2877_v48, %v2715_v50  ;;  %v2884_v48 = vld [vmem:[#allocation14 + $0x8] sm:$0xff]  ;;  %v2883_v50 = vld [vmem:[#allocation14] sm:$0xff] }
 0xa03   : > { %v3079_v53 = vpop.eup %3078 }
 0xa04   : > { %v1643_v54 = vmul.f32 %v3079_v53, %v3071_v35  ;;  %v2882_v35 = vld [vmem:[#allocation13 + $0x74] sm:$0xf0]  ;;  %v2705_v53 = vld [vmem:[#allocation13 + $0x40] sm:$0xf] }
 0xa05   : > { %v2730_v18 = vor.u32 %v2882_v35, %v2729_v34  ;;  %v2895_v34 = vld [vmem:[#allocation14 + $0x60] sm:$0xff] }
 0xa06   : > { %v1644_v55 = vpack.c.bf16 %v1643_v54, %v1643_v54  ;;  %v1699_v56 = vpop.xlane.xlu2 %1698  ;;  %v2876_v54 = vld [vmem:[#allocation13 + $0x44] sm:$0xf0] }
 0xa07   : > { %3080 = vrcp.f32 %v1699_v56  ;;  %v2706_v56 = vor.u32 %v2876_v54, %v2705_v53 }
 0xa08   : > { %2634 = vmatmul.msk.bf16.vlgmr.msra.gmra.mxu0 %vm1009_vm6, %v1644_v55  ;;  %v2875_v55 = vld [vmem:[#allocation13 + $0x44] sm:$0xf] }
 0xa0d   : > { %v3081_v57 = vpop.eup %3080 }
 0xa0e   : > { %v1701_v52 = vmul.f32 %v3081_v57, %v3073_v38  ;;  %v2734_v38 = vor.u32 %v2881_v36, %v2731_v37  ;;  %v2707_v57 = vld [vmem:[#allocation13 + $0x48] sm:$0xf0] }
 0xa10   : > { %v1702_v62 = vpack.c.bf16 %v1701_v52, %v1701_v52  ;;  %2022 = vmatpush.bf16.msrb.mxu3 %v2734_v38  ;;  %v2710_v52 = vor.u32 %v2875_v55, %v2707_v57 }
 0xa14   : > { %v1756_v59 = vpop.xlane.xlu2 %1755  ;;  %v1704_v60 = vpop.permute.xlu1 %1703 }
 0xa15   : > { %3082 = vrcp.f32 %v1756_v59  ;;  %v1709_v61 = vsel %vm1025_vm5, %v1704_v60, 0  ;;  %v2697_v59 = vld [vmem:[#allocation13 + $0x30] sm:$0xf]  ;;  %v2874_v60 = vld [vmem:[#allocation13 + $0x34] sm:$0xf0] }
 0xa16   : > { %1718 = vmatpush.bf16.msrb.mxu2 %v1709_v61  ;;  %v2873_v61 = vld [vmem:[#allocation13 + $0x34] sm:$0xf] }
 0xa19   : > { %2636 = vmatmul.msk.bf16.vlgmr.msrb.gmra.mxu2 %vm1009_vm6, %v1702_v62  ;;  %v2698_v62 = vor.u32 %v2874_v60, %v2697_v59 }
 0xa1a   : > { %2009 = vmatpush.bf16.msra.mxu2 %v2730_v18  ;;  %v2886_v18 = vld [vmem:[#allocation14 + $0x18] sm:$0xff] }
 0xa1b   : > { %v3083_v63 = vpop.eup %3082 }
 0xa1c   : > { %v1758_v1 = vmul.f32 %v3083_v63, %v3075_v43  ;;  %v2879_v43 = vld [vmem:[#allocation13 + $0x64] sm:$0xf]  ;;  %v2699_v63 = vld [vmem:[#allocation13 + $0x38] sm:$0xf0] }
 0xa1d   : > { %v2726_v45 = vor.u32 %v2879_v43, %v2723_v44  ;;  %v3044_v44 = vld [vmem:[%s3924_s3 + $0x2] ss:$0 sm:$0xff] }
 0xa1e   : > { %v1759_v2 = vpack.c.bf16 %v1758_v1, %v1758_v1  ;;  %2010 = vmatpush.bf16.msra.mxu2 %v2722_v19  ;;  %v2702_v1 = vor.u32 %v2873_v61, %v2699_v63 }
 0xa1f   : > { %2023 = vmatpush.bf16.msrb.mxu3 %v2726_v45 }
 0xa20   : > { %2638 = vmatmul.msk.bf16.vlgmr.msrb.gmra.mxu0 %vm1009_vm6, %v1759_v2  ;;  %v2689_v2 = vld [vmem:[#allocation13 + $0x20] sm:$0xf] }
 0xa22   : > { %2011 = vmatpush.bf16.msra.mxu2 %v2714_v49  ;;  %v2892_v49 = vld [vmem:[#allocation14 + $0x48] sm:$0xff] }
 0xa23   : > { %2024 = vmatpush.bf16.msrb.mxu3 %v2718_v51  ;;  %v2891_v51 = vld [vmem:[#allocation14 + $0x40] sm:$0xff] }
 0xa26   : > { %2012 = vmatpush.bf16.msra.mxu2 %v2706_v56 }
 0xa27   : > { %2025 = vmatpush.bf16.msrb.mxu3 %v2710_v52 }
 0xa2a   : > { %2013 = vmatpush.bf16.msra.mxu2 %v2698_v62 }
 0xa2b   : > { %v1603_v3 = vpop.f32.mrf.mxu2  ;;  %2026 = vmatpush.bf16.msrb.mxu3 %v2702_v1 }
 0xa33   : > { %v1605_v4 = vpop.f32.mrf.mxu2 }
 0xa34   : > { %v2871_v4 = vld [vmem:[#allocation13 + $0x24] sm:$0xf] }
 0xa85   : > { %v1663_v5 = vpop.f32.mrf.mxu0 }
 0xa86   : > { %1782 = vrot.lane.b32.xlu2 %v1663_v5, %s3457_s0  ;;  %s3975_s0 = sld [smem:[#allocation35_spill]] }
 0xa8c   : > { %v3042_v29 = vld [vmem:[%s3975_s0] ss:$0 sm:$0xff]  ;;  %s735_s0 = scalar_lea.vmem [#allocation17], %s2388_s8 }
 0xa8d   : > { %v1665_v6 = vpop.f32.mrf.mxu0  ;;  %s2213_s7 = sshll.u32 %s735_s0, 4  ;;  %s2214_s7 = int_to_ptr.vmem [resolvable:$true] %s2213_s7 }
 0xa8e   : > { %v2691_v6 = vld [vmem:[#allocation13 + $0x28] sm:$0xf0] }
 0xa9c   : > { %v1720_v7 = vpop.f32.mrf.mxu2 }
 0xa9d   : > { %v1777_v8 = vpop.f32.mrf.mxu0  ;;  %1786 = vrot.lane.b32.xlu1 %v1720_v7, %s3455_s9  ;;  %v2694_v7 = vor.u32 %v2871_v4, %v2691_v6  ;;  %s3977_s9 = sld [smem:[#allocation37_spill]] }
 0xa9f   : > { %2027 = vmatpush.bf16.msrb.mxu3 %v2694_v7 }
 0xaa3   : > { %s3376_s6 = scalar_lea.hbm %s3977_s9, 16 }
 0xaa4   : > { %v1722_v9 = vpop.f32.mrf.mxu2 }
 0xaa5   : > { %v1779_v10 = vpop.f32.mrf.mxu0  ;;  %1790 = vrot.lane.b32.xlu1 %v1777_v8, %s3456_s24  ;;  %v2681_v8 = vld [vmem:[#allocation13 + $0x10] sm:$0xf]  ;;  %v2870_v9 = vld [vmem:[#allocation13 + $0x14] sm:$0xf0]  ;;  %s2211_s24 = scalar_lea.hbm %s3977_s9, %s2800_s23 }
 0xaa6   : > { %v2869_v10 = vld [vmem:[#allocation13 + $0x14] sm:$0xf]  ;;  %v2682_v11 = vor.u32 %v2870_v9, %v2681_v8  ;;  %s2215_s19 = sshll.u32 %s2211_s24, 4  ;;  %s2216_s19 = int_to_ptr.hbm [resolvable:$true] %s2215_s19 }
 0xaa7   : > { %v2686_v15 = vor.u32 %v2869_v10, %v2683_v12  ;;  %s3370_s15 = sshra.s32 %s2216_s19, 4  ;;  %s3371_s15 = int_to_ptr.hbm [resolvable:$true] %s3370_s15 }
 0xaa8   : > { %s3372_s26 = scalar_lea.hbm %s3371_s15, 8  ;;  %p3377_p7 = scmp.lt.s32.totalorder %s3371_s15, %s3977_s9 }
 0xaa9   : > { %2028 = vmatpush.bf16.msrb.mxu3 %v2686_v15  ;;  %p3373_p3 = scmp.ne.s32.totalorder %s3371_s15, %s3372_s26  ;;  %p3378_p8 = scmp.lt.s32.totalorder %s3376_s6, %s3372_s26 }
 0xaab   : > { %p3374_p5 = pnand %p3373_p3, %p3660_p4  ;;  %p3379_p9 = por %p3378_p8, %p3377_p7 }
 0xaad   : > { %p3375_p12 = pneg %p3374_p5 }
 0xaaf   : > { %p3380_p10 = pnand %p3379_p9, %p3375_p12 }
 0xae0   : > { %v1783_v22 = vpop.permute.xlu2 %1782 }
 0xae1   : > { %v1793_v23 = vsel %vm988_vm4, %v1603_v3, %v1783_v22  ;;  %v2872_v3 = vld [vmem:[#allocation13 + $0x24] sm:$0xf0]  ;;  %v2890_v22 = vld [vmem:[#allocation14 + $0x38] sm:$0xff] }
 0xae2   : > { %v2690_v5 = vor.u32 %v2872_v3, %v2689_v2  ;;  %2167 = vmatpush.bf16.msra.mxu0 %v2890_v22 }
 0xae4   : > { %2014 = vmatpush.bf16.msra.mxu2 %v2690_v5  ;;  %v3045_v5 = vld [vmem:[#allocation16] ss:$0 sm:$0xff] }
 0xae8   : > { %2015 = vmatpush.bf16.msra.mxu2 %v2682_v11 }
 0xaec   : > { %2016 = vmatpush.bf16.msra.mxu2 %v2674_v21 }
 0xb0f   : > { %v1787_v58 = vpop.permute.xlu1 %1786 }
 0xb10   : > { %v1794_v25 = vsel %vm1229_vm7, %v1793_v23, %v1787_v58  ;;  %v2678_v58 = vor.u32 %v2867_v17, %v2675_v20  ;;  %v2898_v23 = vld [vmem:[#allocation14 + $0x78] sm:$0xff] }
 0xb11   : > { %2180 = vmatpush.bf16.msrb.mxu1 %v2898_v23 }
 0xb12   : > { %2029 = vmatpush.bf16.msrb.mxu3 %v2678_v58 }
 0xb17   : > { %v1791_v26 = vpop.permute.xlu1 %1790 }
 0xb18   : > { %v1795_v24 = vsel %vm1231_vm8, %v1794_v25, %v1791_v26 }
 0xb19   : > { %v1796_v28 = vpack.c.bf16 %v1795_v24, %v1795_v24  ;;  %v2889_v24 = vld [vmem:[#allocation14 + $0x30] sm:$0xff] }
 0xb1a   : > { %2168 = vmatpush.bf16.msra.mxu0 %v2889_v24 }
 0xb1b   : > { %1869 = vmatmul.bf16.vlgmr.msra.gmra.mxu1 %v1796_v28  ;;  %v2897_v28 = vld [vmem:[#allocation14 + $0x70] sm:$0xff] }
 0xb1c   : > { %2181 = vmatpush.bf16.msrb.mxu1 %v2897_v28 }
 0xb98   : > { %v1870_v30 = vpop.f32.mrf.mxu1 }
 0xb99   : > { %v1874_v31 = vadd.f32 %v1870_v30, %v3791_v27  ;;  %v2888_v30 = vld [vmem:[#allocation14 + $0x28] sm:$0xff] }
 0xb9a   : > { %2169 = vmatpush.bf16.msra.mxu0 %v2888_v30 }
 0xb9b   : > { %v3865_v32 = vadd.f32 %v3042_v29, %v1874_v31  ;;  %v2896_v31 = vld [vmem:[#allocation14 + $0x68] sm:$0xff] }
 0xb9c   : > { %2182 = vmatpush.bf16.msrb.mxu1 %v2896_v31 }
 0xb9d   : > { %1882 = vadd.xlane.f32.xlu0 %v3865_v32 }
 0xba0   : > { %v1872_v33 = vpop.f32.mrf.mxu1  ;;  %2183 = vmatpush.bf16.msrb.mxu1 %v2895_v34 }
 0xba1   : > { %v2887_v33 = vld [vmem:[#allocation14 + $0x20] sm:$0xff] }
 0xba2   : > { %2170 = vmatpush.bf16.msra.mxu0 %v2887_v33 }
 0xba6   : > { %2171 = vmatpush.bf16.msra.mxu0 %v2886_v18 }
 0xc10   : > { %v1883_v0 = vpop.xlane.xlu0 %1882 }
 0xc11   : > { %v1884_v39 = vmul.f32 %v1883_v0, %v3720_v16  ;;  %v2885_v0 = vld [vmem:[#allocation14 + $0x10] sm:$0xff] }
 0xc12   : > { %2172 = vmatpush.bf16.msra.mxu0 %v2885_v0 }
 0xc13   : > { %v3870_v40 = vsub.f32 %v3865_v32, %v1884_v39  ;;  %v2893_v39 = vld [vmem:[#allocation14 + $0x50] sm:$0xff] }
 0xc15   : > { %v1886_v27 = vmul.f32 %v3870_v40, %v3870_v40 }
 0xc16   : > { %2173 = vmatpush.bf16.msra.mxu0 %v2884_v48 }
 0xc17   : > { %1887 = vadd.xlane.f32.xlu1 %v1886_v27 }
 0xc1a   : > { %2174 = vmatpush.bf16.msra.mxu0 %v2883_v50 }
 0xc8a   : > { %v1888_v25 = vpop.xlane.xlu1 %1887 }
 0xc8b   : > { %v1889_v26 = vmul.f32 %v1888_v25, %v3720_v16  ;;  %v2894_v16 = vld [vmem:[#allocation14 + $0x58] sm:$0xff] }
 0xc8c   : > { %2184 = vmatpush.bf16.msrb.mxu1 %v2894_v16 }
 0xc8d   : > { %v1890_v29 = vadd.f32 1e-06, %v1889_v26 }
 0xc8f   : > { %3084 = vrsqrt.f32 %v1890_v29  ;;  %vm1897_vm13 = vweird.f32 %v1890_v29 }
 0xc90   : > { %2185 = vmatpush.bf16.msrb.mxu1 %v2893_v39 }
 0xc94   : > { %2186 = vmatpush.bf16.msrb.mxu1 %v2892_v49 }
 0xc95   : > { %v3085_v35 = vpop.eup %3084 }
 0xc96   : > { %v1892_v36 = vmul.f32 %v3085_v35, %v1890_v29  ;;  %vm1898_vm12 = vweird.f32 %v3085_v35 }
 0xc97   : > { %vm1899_vm14 = vmor %vm1897_vm13, %vm1898_vm12 }
 0xc98   : > { %v1893_v37 = vmul.f32 %v3085_v35, %v1892_v36  ;;  %2187 = vmatpush.bf16.msrb.mxu1 %v2891_v51 }
 0xc9a   : > { %v1894_v38 = vmul.f32 0.5, %v1893_v37 }
 0xc9c   : > { %v1895_v27 = vsub.f32 1.5, %v1894_v38 }
 0xc9e   : > { %v1896_v41 = vmul.f32 %v3085_v35, %v1895_v27 }
 0xca0   : > { %v1900_v43 = vsel %vm1899_vm14, %v3085_v35, %v1896_v41 }
 0xca1   : > { %v1901_v19 = vmul.f32 %v1900_v43, %v3870_v40  ;;  %v1923_v40 = vld [vmem:[%s3976_s12] sm:$0x3] }
 0xca2   : > { %v1925_v53 = vperm.slane %v1923_v40, 0  ;;  %v1926_v54 = vperm.slane %v1923_v40, 1 }
 0xca3   : > { %v1903_v45 = vmul.f32 %v3043_v42, %v1901_v19 }
 0xca5   : > { %v1905_v46 = vadd.f32 %v3044_v44, %v1903_v45 }
 0xca7   : > { %v1906_v47 = vpack.c.bf16 %v1905_v46, %v1905_v46 }
 0xca9   : > { %2017 = vmatmul.bf16.vlgmr.msra.gmra.mxu2 %v1906_v47  ;;  %2030 = vmatmul.bf16.vlgmr.msrb.gmra.mxu3 %v1906_v47 }
 0xd2c   : > { %v2018_v55 = vpop.f32.mrf.mxu2  ;;  %v2031_v56 = vpop.f32.mrf.mxu3 }
 0xd2d   : > { %v2019_v57 = vadd.f32 %v2018_v55, %v1925_v53  ;;  %v2032_v52 = vadd.f32 %v2031_v56, %v1926_v54 }
 0xd2f   : > { %v2035_v59 = vmax.f32 %v2019_v57, 0.0  ;;  %v2036_v60 = vmax.f32 %v2032_v52, 0.0 }
 0xd31   : > { %v2037_v61 = vpack.c.bf16 %v2035_v59, %v2035_v59  ;;  %v2038_v62 = vpack.c.bf16 %v2036_v60, %v2036_v60 }
 0xd33   : > { %2175 = vmatmul.bf16.vlgmr.msra.gmra.mxu0 %v2037_v61  ;;  %2188 = vmatmul.bf16.vlgmr.msrb.gmra.mxu1 %v2038_v62 }
 0xd34   : > { %v2020_v63 = vpop.f32.mrf.mxu2  ;;  %v2033_v1 = vpop.f32.mrf.mxu3 }
 0xdb0   : > { %v2176_v2 = vpop.f32.mrf.mxu0  ;;  %v2189_v3 = vpop.f32.mrf.mxu1 }
 0xdb1   : > { %v2190_v4 = vadd.f32 %v2189_v3, %v2176_v2 }
 0xdb3   : > { %v2193_v6 = vadd.f32 %v2190_v4, %v3865_v32 }
 0xdb5   : > { %v2198_v7 = vadd.f32 %v3045_v5, %v2193_v6 }
 0xdb7   : > { %2199 = vst [vmem:[%s735_s0] sm:$0xff] %v2198_v7 }
 0xdb8   : > { %v2178_v8 = vpop.f32.mrf.mxu0  ;;  %v2191_v9 = vpop.f32.mrf.mxu1 }
 0xdb9   : > { %3383 = shalt.err (!%p3380_p10)
}
 0xdba   : > { %2933 = dma.vmem_to_hbm [thread:$0]  (%p3660_p4), %s2214_s7, 128, %s2216_s19, %s2201_s20  }
 0xdbb PF: > { %s2227_s11 = sand.u32 1, %s3426_s27   ;;  %p3978_p13 = scmp.ge.s32.totalorder %s3438_s30, 2 }
 0xdbc   : > { %s2228_s13 = scalar_lea.sflag [#allocation4], %s2227_s11 }
 0xdbd   : > { %p2965_p11 = pnand %p3978_p13, %p3664_p6 }
 0xdbf   : > { %p2966_p0 = pneg %p2965_p11 }
 0xdc1   : > { %3421 = dma.done.wait (%p2966_p0), %s2228_s13, 128  }
 0xdc2   : > { %3423 = vsyncadd (%p2966_p0), %s2228_s13, 4294967168  ;;  %p35_p2 = scmp.ge.s32.totalorder %s3634_s22, 4   ;;  %s3979_s27 = smov %s3430_s28 }
 0xdc3   : > { %s3980_s28 = smov %s3434_s29  ;;  %s3981_s29 = smov %s3645_s1 }
 0xdc4   : > { %s3982_s30 = smov %s3634_s22  ;;  %37 = sbr.rel (!%p35_p2) target bundleno = 24 (0x18), region = 172 }
 0xdc9   :  { %2234 = vsyncpa [#allocation3], 1 }
 0xdca   :  { %2236 = vsyncpa [#allocation3 + $0x1], 1 }
 0xdcb   :  { %2237 = vsyncpa [#allocation6], 1 }
 0xdcc   :  { %2238 = vsyncpa [#allocation9], 1 }
 0xdcd   :  { %2239 = vsyncpa [#allocation12], 1 }
 0xdce   :  { %2240 = vsyncpa [#allocation15], 1 }
 0xdcf   :  { %2241 = vsyncpa [#allocation4], 1 }
 0xdd0   :  { %2243 = vsyncpa [#allocation4 + $0x1], 1 }

</bundles_post_ra>
